<compile_context>
chip_gen: v6e
topology: v6e:2x2x1
jax: 0.10.0
libtpu: 0.0.40
codegen_flags: <defaults>
</compile_context>

<pallas_src>
import functools
import math

import jax
import jax.numpy as jnp
from jax.experimental import pallas as pl
from jax.experimental.pallas import tpu as pltpu


_MASK_VALUE = -1e30  # finite "minus infinity": avoids inf-inf NaNs in online softmax


# ---------------------------------------------------------------------------
# Tiling helpers
# ---------------------------------------------------------------------------
def _round_up(x: int, m: int) -> int:
    return ((x + m - 1) // m) * m


def _sublane_granule(dtype) -> int:
    # f32 -> 8 rows per vreg sublane group, bf16 -> 16, int8 -> 32.
    return max(8, 32 // jnp.dtype(dtype).itemsize)


def _pick_tile(dim: int, target: int, granule: int) -> int:
    """Largest multiple of `granule` <= target that divides `dim`; else `dim`."""
    if dim <= target:
        return dim
    t = target - (target % granule)
    while t >= granule:
        if dim % t == 0:
            return t
        t -= granule
    return dim


# ---------------------------------------------------------------------------
# Grouped linear kernel:  y_g = x_g @ w[g] + b[g]
# Several row-groups (different weights) share one pallas_call; the per-M-block
# weight index arrives via scalar prefetch and drives the weight/bias index_map.
# ---------------------------------------------------------------------------
def _grouped_linear_kernel(gidx_ref, x_ref, w_ref, b_ref, o_ref, acc_ref):
    del gidx_ref  # only consumed by the index_maps
    k = pl.program_id(2)

    @pl.when(k == 0)
    def _():
        acc_ref[...] = jnp.zeros_like(acc_ref)

    acc_ref[...] += jnp.dot(
        x_ref[...], w_ref[0], preferred_element_type=jnp.float32
    )

    @pl.when(k == pl.num_programs(2) - 1)
    def _():
        o_ref[...] = (acc_ref[...] + b_ref[0].astype(jnp.float32)).astype(
            o_ref.dtype
        )


def multi_linear(xs, w, b, *, tm_target=512, tn_target=512, tk_target=512):
    """xs: list of (M_g, K); w: (G, K, N); b: (G, N).  Returns list of (M_g, N)."""
    G, K, N = w.shape
    assert len(xs) == G, (len(xs), G)
    dtype = xs[0].dtype
    sub = _sublane_granule(dtype)

    tn = _pick_tile(N, tn_target, 128)
    tk = _pick_tile(K, tk_target, 128)
    max_m = max(x.shape[0] for x in xs)
    tm = min(tm_target, _round_up(max_m, sub))

    # Pad each group's rows to a multiple of tm and build the per-block weight
    # index (avoids degenerate / unaligned tiny launches, e.g. the encoder
    # output projection).
    parts, sizes, gidx = [], [], []
    for g, x in enumerate(xs):
        m = x.shape[0]
        mp = _round_up(m, tm)
        if mp != m:
            x = jnp.pad(x, ((0, mp - m), (0, 0)))
        parts.append(x)
        sizes.append((m, mp))
        gidx.extend([g] * (mp // tm))
    x_cat = parts[0] if len(parts) == 1 else jnp.concatenate(parts, axis=0)
    gidx = jnp.asarray(gidx, dtype=jnp.int32)
    m_total = x_cat.shape[0]
    b3 = b.reshape(G, 1, N)

    # Explicit VMEM budget: double-buffered x/w/b/out tiles + f32 accumulator.
    itemsize = jnp.dtype(dtype).itemsize
    footprint = (
        2 * (tm * tk + tk * tn + tn) * itemsize
        + 2 * tm * tn * itemsize
        + tm * tn * 4
    )
    vmem_limit = int(min(max(2 * footprint, 32 << 20), 48 << 20))

    grid = (m_total // tm, N // tn, K // tk)
    out = pl.pallas_call(
        _grouped_linear_kernel,
        out_shape=jax.ShapeDtypeStruct((m_total, N), dtype),
        grid_spec=pltpu.PrefetchScalarGridSpec(
            num_scalar_prefetch=1,
            grid=grid,
            in_specs=[
                pl.BlockSpec((tm, tk), lambda i, j, k, g: (i, k)),
                pl.BlockSpec((1, tk, tn), lambda i, j, k, g: (g[i], k, j)),
                pl.BlockSpec((1, 1, tn), lambda i, j, k, g: (g[i], 0, j)),
            ],
            out_specs=pl.BlockSpec((tm, tn), lambda i, j, k, g: (i, j)),
            scratch_shapes=[pltpu.VMEM((tm, tn), jnp.float32)],
        ),
        compiler_params=pltpu.CompilerParams(
            dimension_semantics=("parallel", "parallel", "arbitrary"),
            vmem_limit_bytes=vmem_limit,
        ),
    )(gidx, x_cat, w, b3)

    outs, off = [], 0
    for m, mp in sizes:
        outs.append(out[off:off + m])
        off += mp
    return outs


# ---------------------------------------------------------------------------
# Flash-attention kernel (one (batch*head) slice per leading grid index)
# ---------------------------------------------------------------------------
def _flash_attention_kernel(q_ref, k_ref, v_ref, o_ref, q_sc, m_sc, l_sc,
                            acc_sc, *, scale, kv_len, bkv, needs_mask):
    ki = pl.program_id(2)

    @pl.when(ki == 0)
    def _():
        # Cache the scaled Q tile once; it stays resident across the kv axis.
        q_sc[...] = q_ref[0] * scale
        m_sc[...] = jnp.full_like(m_sc, _MASK_VALUE)
        l_sc[...] = jnp.zeros_like(l_sc)
        acc_sc[...] = jnp.zeros_like(acc_sc)

    k = k_ref[0]                                  # (bkv, hd) input dtype
    v = v_ref[0]                                  # (bkv, hd) input dtype

    # s = (q * scale) @ k^T in the input dtype, f32 accumulation on the MXU.
    s = jax.lax.dot_general(
        q_sc[...], k, (((1,), (1,)), ((), ())),
        preferred_element_type=jnp.float32,
    )                                             # (bq, bkv) f32

    if needs_mask:
        key_idx = ki * bkv + jax.lax.broadcasted_iota(jnp.int32, s.shape, 1)
        s = jnp.where(key_idx < kv_len, s, _MASK_VALUE)

    m_prev = m_sc[...]                            # (bq, 1)
    m_new = jnp.maximum(m_prev, jnp.max(s, axis=-1, keepdims=True))
    alpha = jnp.exp(m_prev - m_new)
    p = jnp.exp(s - m_new)

    l_sc[...] = alpha * l_sc[...] + jnp.sum(p, axis=-1, keepdims=True)
    acc_sc[...] = alpha * acc_sc[...] + jnp.dot(
        p.astype(v.dtype), v, preferred_element_type=jnp.float32
    )
    m_sc[...] = m_new

    @pl.when(ki == pl.num_programs(2) - 1)
    def _():
        inv_l = pl.reciprocal(l_sc[...], approx=True)   # EUP, not a VPU divide
        o_ref[0] = (acc_sc[...] * inv_l).astype(o_ref.dtype)


def flash_attention(q, k, v, *, kv_len):
    """q, k, v: (B*H, Tp, hd) with Tp a multiple of 128.  Softmax runs over the
    first `kv_len` keys; padded keys are masked inside the kernel."""
    BH, Tp, hd = q.shape
    assert Tp % 128 == 0, Tp
    scale = 1.0 / math.sqrt(hd)
    bq = _pick_tile(Tp, 256, 128)
    bkv = _pick_tile(Tp, 256, 128)
    needs_mask = kv_len != Tp

    kernel = functools.partial(
        _flash_attention_kernel, scale=scale, kv_len=kv_len, bkv=bkv,
        needs_mask=needs_mask)

    grid = (BH, Tp // bq, Tp // bkv)
    return pl.pallas_call(
        kernel,
        out_shape=jax.ShapeDtypeStruct((BH, Tp, hd), q.dtype),
        grid_spec=pltpu.PrefetchScalarGridSpec(
            num_scalar_prefetch=0,
            grid=grid,
            in_specs=[
                pl.BlockSpec((1, bq, hd), lambda b, qi, ki: (b, qi, 0)),
                pl.BlockSpec((1, bkv, hd), lambda b, qi, ki: (b, ki, 0)),
                pl.BlockSpec((1, bkv, hd), lambda b, qi, ki: (b, ki, 0)),
            ],
            out_specs=pl.BlockSpec((1, bq, hd), lambda b, qi, ki: (b, qi, 0)),
            scratch_shapes=[
                pltpu.VMEM((bq, hd), q.dtype),      # cached scaled Q
                pltpu.VMEM((bq, 1), jnp.float32),   # running max
                pltpu.VMEM((bq, 1), jnp.float32),   # running sum
                pltpu.VMEM((bq, hd), jnp.float32),  # output accumulator
            ],
        ),
        compiler_params=pltpu.CompilerParams(
            dimension_semantics=("parallel", "parallel", "arbitrary"),
        ),
    )(q, k, v)


# ---------------------------------------------------------------------------
# Parameter preparation (hoisted out of the per-call path)
# ---------------------------------------------------------------------------
def prepare_params(params, context_pre_only):
    def fuse(names):
        w = jnp.concatenate([params[n]["w"].T for n in names], axis=1)  # (D, 3D)
        b = jnp.concatenate([params[n]["b"] for n in names], axis=0)    # (3D,)
        return w, b

    w_h, b_h = fuse(["to_q", "to_k", "to_v"])
    w_e, b_e = fuse(["add_q_proj", "add_k_proj", "add_v_proj"])
    prepared = {
        "qkv_w": jnp.stack([w_h, w_e]),          # (2, D, 3D)
        "qkv_b": jnp.stack([b_h, b_e]),          # (2, 3D)
    }
    if context_pre_only:
        prepared["out_w"] = params["to_out"]["w"].T[None]
        prepared["out_b"] = params["to_out"]["b"][None]
    else:
        prepared["out_w"] = jnp.stack(
            [params["to_out"]["w"].T, params["to_add_out"]["w"].T])
        prepared["out_b"] = jnp.stack(
            [params["to_out"]["b"], params["to_add_out"]["b"]])
    return prepared


# ---------------------------------------------------------------------------
# Full module forward
# ---------------------------------------------------------------------------
def sd3_attention(hidden_states, encoder_hidden_states, prepared, *,
                  num_heads, context_pre_only):
    B, TH, D = hidden_states.shape
    _, TE, _ = encoder_hidden_states.shape
    T = TH + TE
    hd = D // num_heads

    # Fused QKV projections for the hidden + encoder streams: ONE launch.
    qkv_h, qkv_e = multi_linear(
        [hidden_states.reshape(B * TH, D),
         encoder_hidden_states.reshape(B * TE, D)],
        prepared["qkv_w"], prepared["qkv_b"])

    # Hidden tokens first, then encoder tokens (matches the torch module).
    qkv = jnp.concatenate(
        [qkv_h.reshape(B, TH, 3 * D), qkv_e.reshape(B, TE, 3 * D)], axis=1)

    # Pad the joint sequence to a multiple of 128 so bq/bkv stay 128/256
    # instead of degenerating to a full (T, T) score tile.
    Tp = _round_up(T, 128)
    if Tp != T:
        qkv = jnp.pad(qkv, ((0, 0), (0, Tp - T), (0, 0)))

    # TODO(synk): consume q/k/v straight from (B, Tp, 3D) inside the kernel and
    # write a lane-dense (B, Tp, D) output to drop these transposes entirely.
    qkv = qkv.reshape(B, Tp, 3, num_heads, hd).transpose(2, 0, 3, 1, 4)
    q, k, v = qkv[0], qkv[1], qkv[2]                     # (B, H, Tp, hd)

    BH = B * num_heads
    o = flash_attention(q.reshape(BH, Tp, hd), k.reshape(BH, Tp, hd),
                        v.reshape(BH, Tp, hd), kv_len=T)
    o = o.reshape(B, num_heads, Tp, hd).transpose(0, 2, 1, 3).reshape(B, Tp, D)

    h, e = o[:, :TH], o[:, TH:T]

    if context_pre_only:
        (h_out,) = multi_linear([h.reshape(B * TH, D)],
                                prepared["out_w"], prepared["out_b"])
        return h_out.reshape(B, TH, D), e

    # Both output projections (different weights) in ONE launch.
    h_out, e_out = multi_linear(
        [h.reshape(B * TH, D), e.reshape(B * TE, D)],
        prepared["out_w"], prepared["out_b"])
    return h_out.reshape(B, TH, D), e_out.reshape(B, TE, D)


# ---------------------------------------------------------------------------
# Pure-JAX reference (mirror of the PyTorch forward)
# ---------------------------------------------------------------------------
def _reference(hidden, enc, params, num_heads, context_pre_only):
    def lin(x, p):
        return x @ p["w"].T + p["b"]

    B, TH, D = hidden.shape
    TE = enc.shape[1]
    T = TH + TE
    hd = D // num_heads

    with jax.default_matmul_precision("highest"):
        q = jnp.concatenate(
            [lin(hidden, params["to_q"]), lin(enc, params["add_q_proj"])], axis=1)
        k = jnp.concatenate(
            [lin(hidden, params["to_k"]), lin(enc, params["add_k_proj"])], axis=1)
        v = jnp.concatenate(
            [lin(hidden, params["to_v"]), lin(enc, params["add_v_proj"])], axis=1)

        def heads(x):
            return x.reshape(B, T, num_heads, hd).transpose(0, 2, 1, 3)

        qh, kh, vh = heads(q), heads(k), heads(v)
        s = jnp.einsum("bhqd,bhkd->bhqk", qh, kh) / math.sqrt(hd)
        p = jax.nn.softmax(s, axis=-1)
        o = jnp.einsum("bhqk,bhkd->bhqd", p, vh)
        o = o.transpose(0, 2, 1, 3).reshape(B, T, D)

        h, e = o[:, :TH], o[:, TH:]
        h = lin(h, params["to_out"])
        if not context_pre_only:
            e = lin(e, params["to_add_out"])
    return h, e


# ---------------------------------------------------------------------------
if __name__ == "__main__":
    key = jax.random.PRNGKey(0)
    B, TH, TE = 2, 8, 8
    query_dim, num_heads = 32, 2

    names = ["to_q", "to_k", "to_v", "add_q_proj", "add_k_proj", "add_v_proj",
             "to_out", "to_add_out"]
    keys = jax.random.split(key, 2 * len(names) + 2)

    params = {}
    for i, n in enumerate(names):
        w = jax.random.normal(keys[2 * i], (query_dim, query_dim),
                              jnp.float32) / math.sqrt(query_dim)
        b = jax.random.normal(keys[2 * i + 1], (query_dim,), jnp.float32) * 0.1
        params[n] = {"w": w, "b": b}

    hidden = jax.random.normal(keys[-2], (B, TH, query_dim), jnp.float32)
    enc = jax.random.normal(keys[-1], (B, TE, query_dim), jnp.float32)

    for context_pre_only in (False, True):
        prepared = prepare_params(params, context_pre_only)
        fwd = jax.jit(functools.partial(
            sd3_attention, num_heads=num_heads,
            context_pre_only=context_pre_only))
        h_out, e_out = fwd(hidden, enc, prepared)
        h_out = jax.block_until_ready(h_out)
        e_out = jax.block_until_ready(e_out)

        h_ref, e_ref = _reference(hidden, enc, params, num_heads,
                                  context_pre_only)
        assert h_out.shape == (B, TH, query_dim), h_out.shape
        assert e_out.shape == (B, TE, query_dim), e_out.shape
        err_h = float(jnp.max(jnp.abs(h_out - h_ref)))
        err_e = float(jnp.max(jnp.abs(e_out - e_ref)))
        assert err_h < 2e-2 and err_e < 2e-2, (context_pre_only, err_h, err_e)

    print("KERNEL_OK")
</pallas_src>

<mosaic_0001>
module attributes {stable_mosaic.version = 11 : i64} {
  func.func @_flash_attention_kernel(%arg0: i32, %arg1: i32, %arg2: i32, %arg3: memref<1x128x16xf32, #tpu.memory_space<vmem>>, %arg4: memref<1x128x16xf32, #tpu.memory_space<vmem>>, %arg5: memref<1x128x16xf32, #tpu.memory_space<vmem>>, %arg6: memref<1x128x16xf32, #tpu.memory_space<vmem>>, %arg7: memref<128x16xf32, #tpu.memory_space<vmem>>, %arg8: memref<128x1xf32, #tpu.memory_space<vmem>>, %arg9: memref<128x1xf32, #tpu.memory_space<vmem>>, %arg10: memref<128x16xf32, #tpu.memory_space<vmem>>) attributes {dimension_semantics = [#tpu.dimension_semantics<parallel>, #tpu.dimension_semantics<parallel>, #tpu.dimension_semantics<arbitrary>], iteration_bounds = array<i64: 4, 1, 1>, scalar_prefetch = 0 : i64, scratch_operands = 4 : i64, tpu.core_type = #tpu.core_type<tc>, window_params = [{transform_indices = @transform_0, window_bounds = array<i64: 1, 128, 16>}, {transform_indices = @transform_1, window_bounds = array<i64: 1, 128, 16>}, {transform_indices = @transform_2, window_bounds = array<i64: 1, 128, 16>}, {transform_indices = @transform_3, window_bounds = array<i64: 1, 128, 16>}]} {
    %c0_i32 = arith.constant 0 : i32
    %0 = arith.cmpi eq, %arg2, %c0_i32 : i32
    %1 = arith.extui %0 : i1 to i32
    %c0_i32_0 = arith.constant 0 : i32
    %2 = arith.cmpi ne, %1, %c0_i32_0 : i32
    scf.if %2 {
      %c0_26 = arith.constant 0 : index
      %c0_27 = arith.constant 0 : index
      %c0_28 = arith.constant 0 : index
      %42 = vector.load %arg3[%c0_26, %c0_27, %c0_28] : memref<1x128x16xf32, #tpu.memory_space<vmem>>, vector<1x128x16xf32>
      %43 = vector.shape_cast %42 : vector<1x128x16xf32> to vector<128x16xf32>
      %cst_29 = arith.constant 2.500000e-01 : f32
      %44 = vector.broadcast %cst_29 : f32 to vector<128x16xf32>
      %45 = arith.mulf %43, %44 : vector<128x16xf32>
      %c0_30 = arith.constant 0 : index
      %c0_31 = arith.constant 0 : index
      %46 = vector.load %arg7[%c0_30, %c0_31] : memref<128x16xf32, #tpu.memory_space<vmem>>, vector<128x16xf32>
      tpu.vector_store %arg7[%c0_30, %c0_31], %45 {strides = array<i32>} : memref<128x16xf32, #tpu.memory_space<vmem>>, vector<128x16xf32>,
      %cst_32 = arith.constant -1.000000e+30 : f32
      %47 = vector.broadcast %cst_32 : f32 to vector<128x1xf32>
      %c0_33 = arith.constant 0 : index
      %c0_34 = arith.constant 0 : index
      %48 = vector.load %arg8[%c0_33, %c0_34] : memref<128x1xf32, #tpu.memory_space<vmem>>, vector<128x1xf32>
      tpu.vector_store %arg8[%c0_33, %c0_34], %47 {strides = array<i32>} : memref<128x1xf32, #tpu.memory_space<vmem>>, vector<128x1xf32>,
      %cst_35 = arith.constant 0.000000e+00 : f32
      %49 = vector.broadcast %cst_35 : f32 to vector<128x1xf32>
      %c0_36 = arith.constant 0 : index
      %c0_37 = arith.constant 0 : index
      %50 = vector.load %arg9[%c0_36, %c0_37] : memref<128x1xf32, #tpu.memory_space<vmem>>, vector<128x1xf32>
      tpu.vector_store %arg9[%c0_36, %c0_37], %49 {strides = array<i32>} : memref<128x1xf32, #tpu.memory_space<vmem>>, vector<128x1xf32>,
      %cst_38 = arith.constant 0.000000e+00 : f32
      %51 = vector.broadcast %cst_38 : f32 to vector<128x16xf32>
      %c0_39 = arith.constant 0 : index
      %c0_40 = arith.constant 0 : index
      %52 = vector.load %arg10[%c0_39, %c0_40] : memref<128x16xf32, #tpu.memory_space<vmem>>, vector<128x16xf32>
      tpu.vector_store %arg10[%c0_39, %c0_40], %51 {strides = array<i32>} : memref<128x16xf32, #tpu.memory_space<vmem>>, vector<128x16xf32>,
    } else {
    }
    %c0 = arith.constant 0 : index
    %c0_1 = arith.constant 0 : index
    %c0_2 = arith.constant 0 : index
    %3 = vector.load %arg4[%c0, %c0_1, %c0_2] : memref<1x128x16xf32, #tpu.memory_space<vmem>>, vector<1x128x16xf32>
    %4 = vector.shape_cast %3 : vector<1x128x16xf32> to vector<128x16xf32>
    %c0_3 = arith.constant 0 : index
    %c0_4 = arith.constant 0 : index
    %c0_5 = arith.constant 0 : index
    %5 = vector.load %arg5[%c0_3, %c0_4, %c0_5] : memref<1x128x16xf32, #tpu.memory_space<vmem>>, vector<1x128x16xf32>
    %6 = vector.shape_cast %5 : vector<1x128x16xf32> to vector<128x16xf32>
    %c0_6 = arith.constant 0 : index
    %c0_7 = arith.constant 0 : index
    %7 = vector.load %arg7[%c0_6, %c0_7] : memref<128x16xf32, #tpu.memory_space<vmem>>, vector<128x16xf32>
    %cst = arith.constant dense<0.000000e+00> : vector<128x128xf32>
    %8 = tpu.matmul %7, %4, %cst {dimension_numbers = #tpu.dot_dimension_numbers<[1], [1], [0], [0], [0, 0, 1, 0], [], []>} : vector<128x16xf32>, vector<128x16xf32>, vector<128x128xf32> -> vector<128x128xf32>
    %c128_i32 = arith.constant 128 : i32
    %9 = arith.muli %arg2, %c128_i32 : i32
    %10 = tpu.iota {dimensions = array<i32: 1>} : vector<128x128xi32>
    %11 = vector.broadcast %9 : i32 to vector<128x128xi32>
    %12 = arith.addi %11, %10 : vector<128x128xi32>
    %c16_i32 = arith.constant 16 : i32
    %13 = vector.broadcast %c16_i32 : i32 to vector<128x128xi32>
    %14 = arith.cmpi slt, %12, %13 : vector<128x128xi32>
    %cst_8 = arith.constant -1.000000e+30 : f32
    %15 = vector.broadcast %cst_8 : f32 to vector<128x128xf32>
    %16 = arith.select %14, %8, %15 : vector<128x128xi1>, vector<128x128xf32>
    %c0_9 = arith.constant 0 : index
    %c0_10 = arith.constant 0 : index
    %17 = vector.load %arg8[%c0_9, %c0_10] : memref<128x1xf32, #tpu.memory_space<vmem>>, vector<128x1xf32>
    %cst_11 = arith.constant dense<0xFF800000> : vector<128xf32>
    %18 = vector.multi_reduction <maximumf>, %16, %cst_11 [1] : vector<128x128xf32> to vector<128xf32>
    %19 = vector.shape_cast %18 : vector<128xf32> to vector<128x1xf32>
    %20 = arith.maximumf %17, %19 : vector<128x1xf32>
    %21 = arith.subf %17, %20 : vector<128x1xf32>
    %22 = math.exp %21 : vector<128x1xf32>
    %23 = vector.broadcast %20 : vector<128x1xf32> to vector<128x128xf32>
    %24 = arith.subf %16, %23 : vector<128x128xf32>
    %25 = math.exp %24 : vector<128x128xf32>
    %c0_12 = arith.constant 0 : index
    %c0_13 = arith.constant 0 : index
    %26 = vector.load %arg9[%c0_12, %c0_13] : memref<128x1xf32, #tpu.memory_space<vmem>>, vector<128x1xf32>
    %27 = arith.mulf %22, %26 : vector<128x1xf32>
    %cst_14 = arith.constant dense<0.000000e+00> : vector<128xf32>
    %28 = vector.multi_reduction <add>, %25, %cst_14 [1] : vector<128x128xf32> to vector<128xf32>
    %29 = vector.shape_cast %28 : vector<128xf32> to vector<128x1xf32>
    %30 = arith.addf %27, %29 : vector<128x1xf32>
    %c0_15 = arith.constant 0 : index
    %c0_16 = arith.constant 0 : index
    %31 = vector.load %arg9[%c0_15, %c0_16] : memref<128x1xf32, #tpu.memory_space<vmem>>, vector<128x1xf32>
    tpu.vector_store %arg9[%c0_15, %c0_16], %30 {strides = array<i32>} : memref<128x1xf32, #tpu.memory_space<vmem>>, vector<128x1xf32>,
    %c0_17 = arith.constant 0 : index
    %c0_18 = arith.constant 0 : index
    %32 = vector.load %arg10[%c0_17, %c0_18] : memref<128x16xf32, #tpu.memory_space<vmem>>, vector<128x16xf32>
    %33 = vector.broadcast %22 : vector<128x1xf32> to vector<128x16xf32>
    %34 = arith.mulf %33, %32 : vector<128x16xf32>
    %cst_19 = arith.constant dense<0.000000e+00> : vector<128x16xf32>
    %35 = tpu.matmul %25, %6, %cst_19 {dimension_numbers = #tpu.dot_dimension_numbers<[1], [0], [0], [1], [0, 0, 1, 1], [], []>} : vector<128x128xf32>, vector<128x16xf32>, vector<128x16xf32> -> vector<128x16xf32>
    %36 = arith.addf %34, %35 : vector<128x16xf32>
    %c0_20 = arith.constant 0 : index
    %c0_21 = arith.constant 0 : index
    %37 = vector.load %arg10[%c0_20, %c0_21] : memref<128x16xf32, #tpu.memory_space<vmem>>, vector<128x16xf32>
    tpu.vector_store %arg10[%c0_20, %c0_21], %36 {strides = array<i32>} : memref<128x16xf32, #tpu.memory_space<vmem>>, vector<128x16xf32>,
    %c0_22 = arith.constant 0 : index
    %c0_23 = arith.constant 0 : index
    %38 = vector.load %arg8[%c0_22, %c0_23] : memref<128x1xf32, #tpu.memory_space<vmem>>, vector<128x1xf32>
    tpu.vector_store %arg8[%c0_22, %c0_23], %20 {strides = array<i32>} : memref<128x1xf32, #tpu.memory_space<vmem>>, vector<128x1xf32>,
    %c0_i32_24 = arith.constant 0 : i32
    %39 = arith.cmpi eq, %arg2, %c0_i32_24 : i32
    %40 = arith.extui %39 : i1 to i32
    %c0_i32_25 = arith.constant 0 : i32
    %41 = arith.cmpi ne, %40, %c0_i32_25 : i32
    scf.if %41 {
      %c0_26 = arith.constant 0 : index
      %c0_27 = arith.constant 0 : index
      %42 = vector.load %arg9[%c0_26, %c0_27] : memref<128x1xf32, #tpu.memory_space<vmem>>, vector<128x1xf32>
      %43 = tpu.reciprocal %42 {approx = true} : vector<128x1xf32> -> vector<128x1xf32>
      %c0_28 = arith.constant 0 : index
      %c0_29 = arith.constant 0 : index
      %44 = vector.load %arg10[%c0_28, %c0_29] : memref<128x16xf32, #tpu.memory_space<vmem>>, vector<128x16xf32>
      %45 = vector.broadcast %43 : vector<128x1xf32> to vector<128x16xf32>
      %46 = arith.mulf %44, %45 : vector<128x16xf32>
      %c0_30 = arith.constant 0 : index
      %c0_31 = arith.constant 0 : index
      %c0_32 = arith.constant 0 : index
      %47 = vector.load %arg6[%c0_30, %c0_31, %c0_32] : memref<1x128x16xf32, #tpu.memory_space<vmem>>, vector<1x128x16xf32>
      %48 = vector.shape_cast %47 : vector<1x128x16xf32> to vector<128x16xf32>
      %49 = vector.shape_cast %46 : vector<128x16xf32> to vector<1x128x16xf32>
      tpu.vector_store %arg6[%c0_30, %c0_31, %c0_32], %49 {strides = array<i32>} : memref<1x128x16xf32, #tpu.memory_space<vmem>>, vector<1x128x16xf32>,
    } else {
    }
    return
  }
  func.func @transform_0(%arg0: i32, %arg1: i32, %arg2: i32) -> (i32, i32, i32) {
    %c0_i32 = arith.constant 0 : i32
    %c0_i32_0 = arith.constant 0 : i32
    return %arg0, %arg1, %c0_i32 : i32, i32, i32
  }
  func.func @transform_1(%arg0: i32, %arg1: i32, %arg2: i32) -> (i32, i32, i32) {
    %c0_i32 = arith.constant 0 : i32
    %c0_i32_0 = arith.constant 0 : i32
    return %arg0, %arg2, %c0_i32 : i32, i32, i32
  }
  func.func @transform_2(%arg0: i32, %arg1: i32, %arg2: i32) -> (i32, i32, i32) {
    %c0_i32 = arith.constant 0 : i32
    %c0_i32_0 = arith.constant 0 : i32
    return %arg0, %arg2, %c0_i32 : i32, i32, i32
  }
  func.func @transform_3(%arg0: i32, %arg1: i32, %arg2: i32) -> (i32, i32, i32) {
    %c0_i32 = arith.constant 0 : i32
    %c0_i32_0 = arith.constant 0 : i32
    return %arg0, %arg1, %c0_i32 : i32, i32, i32
  }
}

module attributes {stable_mosaic.version = 11 : i64} {
  func.func @_grouped_linear_kernel(%arg0: i32, %arg1: i32, %arg2: i32, %arg3: memref<2xi32, #tpu.memory_space<smem>>, %arg4: memref<16x32xf32, #tpu.memory_space<vmem>>, %arg5: memref<1x32x96xf32, #tpu.memory_space<vmem>>, %arg6: memref<1x1x96xf32, #tpu.memory_space<vmem>>, %arg7: memref<16x96xf32, #tpu.memory_space<vmem>>, %arg8: memref<16x96xf32, #tpu.memory_space<vmem>>) attributes {dimension_semantics = [#tpu.dimension_semantics<parallel>, #tpu.dimension_semantics<parallel>, #tpu.dimension_semantics<arbitrary>], iteration_bounds = array<i64: 2, 1, 1>, scalar_prefetch = 1 : i64, scratch_operands = 1 : i64, tpu.core_type = #tpu.core_type<tc>, window_params = [{transform_indices = @transform_0, window_bounds = array<i64: 16, 32>}, {transform_indices = @transform_1, window_bounds = array<i64: 1, 32, 96>}, {transform_indices = @transform_2, window_bounds = array<i64: 1, 1, 96>}, {transform_indices = @transform_3, window_bounds = array<i64: 16, 96>}]} {
    %c0_i32 = arith.constant 0 : i32
    %0 = arith.cmpi eq, %arg2, %c0_i32 : i32
    %1 = arith.extui %0 : i1 to i32
    %c0_i32_0 = arith.constant 0 : i32
    %2 = arith.cmpi ne, %1, %c0_i32_0 : i32
    scf.if %2 {
      %cst_11 = arith.constant 0.000000e+00 : f32
      %13 = vector.broadcast %cst_11 : f32 to vector<16x96xf32>
      %c0_12 = arith.constant 0 : index
      %c0_13 = arith.constant 0 : index
      %14 = vector.load %arg8[%c0_12, %c0_13] : memref<16x96xf32, #tpu.memory_space<vmem>>, vector<16x96xf32>
      tpu.vector_store %arg8[%c0_12, %c0_13], %13 {strides = array<i32>} : memref<16x96xf32, #tpu.memory_space<vmem>>, vector<16x96xf32>,
    } else {
    }
    %c0 = arith.constant 0 : index
    %c0_1 = arith.constant 0 : index
    %3 = vector.load %arg8[%c0, %c0_1] : memref<16x96xf32, #tpu.memory_space<vmem>>, vector<16x96xf32>
    %c0_2 = arith.constant 0 : index
    %c0_3 = arith.constant 0 : index
    %4 = vector.load %arg4[%c0_2, %c0_3] : memref<16x32xf32, #tpu.memory_space<vmem>>, vector<16x32xf32>
    %c0_4 = arith.constant 0 : index
    %c0_5 = arith.constant 0 : index
    %c0_6 = arith.constant 0 : index
    %5 = vector.load %arg5[%c0_4, %c0_5, %c0_6] : memref<1x32x96xf32, #tpu.memory_space<vmem>>, vector<1x32x96xf32>
    %6 = vector.shape_cast %5 : vector<1x32x96xf32> to vector<32x96xf32>
    %cst = arith.constant dense<0.000000e+00> : vector<16x96xf32>
    %7 = tpu.matmul %4, %6, %cst {dimension_numbers = #tpu.dot_dimension_numbers<[1], [0], [0], [1], [0, 0, 1, 1], [], []>} : vector<16x32xf32>, vector<32x96xf32>, vector<16x96xf32> -> vector<16x96xf32>
    %8 = arith.addf %3, %7 : vector<16x96xf32>
    %c0_7 = arith.constant 0 : index
    %c0_8 = arith.constant 0 : index
    %9 = vector.load %arg8[%c0_7, %c0_8] : memref<16x96xf32, #tpu.memory_space<vmem>>, vector<16x96xf32>
    tpu.vector_store %arg8[%c0_7, %c0_8], %8 {strides = array<i32>} : memref<16x96xf32, #tpu.memory_space<vmem>>, vector<16x96xf32>,
    %c0_i32_9 = arith.constant 0 : i32
    %10 = arith.cmpi eq, %arg2, %c0_i32_9 : i32
    %11 = arith.extui %10 : i1 to i32
    %c0_i32_10 = arith.constant 0 : i32
    %12 = arith.cmpi ne, %11, %c0_i32_10 : i32
    scf.if %12 {
      %c0_11 = arith.constant 0 : index
      %c0_12 = arith.constant 0 : index
      %13 = vector.load %arg8[%c0_11, %c0_12] : memref<16x96xf32, #tpu.memory_space<vmem>>, vector<16x96xf32>
      %c0_13 = arith.constant 0 : index
      %c0_14 = arith.constant 0 : index
      %c0_15 = arith.constant 0 : index
      %14 = vector.load %arg6[%c0_13, %c0_14, %c0_15] : memref<1x1x96xf32, #tpu.memory_space<vmem>>, vector<1x1x96xf32>
      %15 = vector.shape_cast %14 : vector<1x1x96xf32> to vector<1x96xf32>
      %16 = vector.broadcast %15 : vector<1x96xf32> to vector<16x96xf32>
      %17 = arith.addf %13, %16 : vector<16x96xf32>
      %c0_16 = arith.constant 0 : index
      %c0_17 = arith.constant 0 : index
      %18 = vector.load %arg7[%c0_16, %c0_17] : memref<16x96xf32, #tpu.memory_space<vmem>>, vector<16x96xf32>
      tpu.vector_store %arg7[%c0_16, %c0_17], %17 {strides = array<i32>} : memref<16x96xf32, #tpu.memory_space<vmem>>, vector<16x96xf32>,
    } else {
    }
    return
  }
  func.func @transform_0(%arg0: i32, %arg1: i32, %arg2: i32, %arg3: memref<2xi32, #tpu.memory_space<smem>>) -> (i32, i32) {
    %c0_i32 = arith.constant 0 : i32
    return %arg0, %arg2 : i32, i32
  }
  func.func @transform_1(%arg0: i32, %arg1: i32, %arg2: i32, %arg3: memref<2xi32, #tpu.memory_space<smem>>) -> (i32, i32, i32) {
    %0 = arith.index_cast %arg0 : i32 to index
    %1 = memref.load %arg3[%0] : memref<2xi32, #tpu.memory_space<smem>>
    %c0_i32 = arith.constant 0 : i32
    return %1, %arg2, %arg1 : i32, i32, i32
  }
  func.func @transform_2(%arg0: i32, %arg1: i32, %arg2: i32, %arg3: memref<2xi32, #tpu.memory_space<smem>>) -> (i32, i32, i32) {
    %0 = arith.index_cast %arg0 : i32 to index
    %1 = memref.load %arg3[%0] : memref<2xi32, #tpu.memory_space<smem>>
    %c0_i32 = arith.constant 0 : i32
    %c0_i32_0 = arith.constant 0 : i32
    return %1, %c0_i32, %arg1 : i32, i32, i32
  }
  func.func @transform_3(%arg0: i32, %arg1: i32, %arg2: i32, %arg3: memref<2xi32, #tpu.memory_space<smem>>) -> (i32, i32) {
    %c0_i32 = arith.constant 0 : i32
    return %arg0, %arg1 : i32, i32
  }
}

module attributes {stable_mosaic.version = 11 : i64} {
  func.func @_grouped_linear_kernel(%arg0: i32, %arg1: i32, %arg2: i32, %arg3: memref<2xi32, #tpu.memory_space<smem>>, %arg4: memref<16x32xf32, #tpu.memory_space<vmem>>, %arg5: memref<1x32x32xf32, #tpu.memory_space<vmem>>, %arg6: memref<1x1x32xf32, #tpu.memory_space<vmem>>, %arg7: memref<16x32xf32, #tpu.memory_space<vmem>>, %arg8: memref<16x32xf32, #tpu.memory_space<vmem>>) attributes {dimension_semantics = [#tpu.dimension_semantics<parallel>, #tpu.dimension_semantics<parallel>, #tpu.dimension_semantics<arbitrary>], iteration_bounds = array<i64: 2, 1, 1>, scalar_prefetch = 1 : i64, scratch_operands = 1 : i64, tpu.core_type = #tpu.core_type<tc>, window_params = [{transform_indices = @transform_0, window_bounds = array<i64: 16, 32>}, {transform_indices = @transform_1, window_bounds = array<i64: 1, 32, 32>}, {transform_indices = @transform_2, window_bounds = array<i64: 1, 1, 32>}, {transform_indices = @transform_3, window_bounds = array<i64: 16, 32>}]} {
    %c0_i32 = arith.constant 0 : i32
    %0 = arith.cmpi eq, %arg2, %c0_i32 : i32
    %1 = arith.extui %0 : i1 to i32
    %c0_i32_0 = arith.constant 0 : i32
    %2 = arith.cmpi ne, %1, %c0_i32_0 : i32
    scf.if %2 {
      %cst_11 = arith.constant 0.000000e+00 : f32
      %13 = vector.broadcast %cst_11 : f32 to vector<16x32xf32>
      %c0_12 = arith.constant 0 : index
      %c0_13 = arith.constant 0 : index
      %14 = vector.load %arg8[%c0_12, %c0_13] : memref<16x32xf32, #tpu.memory_space<vmem>>, vector<16x32xf32>
      tpu.vector_store %arg8[%c0_12, %c0_13], %13 {strides = array<i32>} : memref<16x32xf32, #tpu.memory_space<vmem>>, vector<16x32xf32>,
    } else {
    }
    %c0 = arith.constant 0 : index
    %c0_1 = arith.constant 0 : index
    %3 = vector.load %arg8[%c0, %c0_1] : memref<16x32xf32, #tpu.memory_space<vmem>>, vector<16x32xf32>
    %c0_2 = arith.constant 0 : index
    %c0_3 = arith.constant 0 : index
    %4 = vector.load %arg4[%c0_2, %c0_3] : memref<16x32xf32, #tpu.memory_space<vmem>>, vector<16x32xf32>
    %c0_4 = arith.constant 0 : index
    %c0_5 = arith.constant 0 : index
    %c0_6 = arith.constant 0 : index
    %5 = vector.load %arg5[%c0_4, %c0_5, %c0_6] : memref<1x32x32xf32, #tpu.memory_space<vmem>>, vector<1x32x32xf32>
    %6 = vector.shape_cast %5 : vector<1x32x32xf32> to vector<32x32xf32>
    %cst = arith.constant dense<0.000000e+00> : vector<16x32xf32>
    %7 = tpu.matmul %4, %6, %cst {dimension_numbers = #tpu.dot_dimension_numbers<[1], [0], [0], [1], [0, 0, 1, 1], [], []>} : vector<16x32xf32>, vector<32x32xf32>, vector<16x32xf32> -> vector<16x32xf32>
    %8 = arith.addf %3, %7 : vector<16x32xf32>
    %c0_7 = arith.constant 0 : index
    %c0_8 = arith.constant 0 : index
    %9 = vector.load %arg8[%c0_7, %c0_8] : memref<16x32xf32, #tpu.memory_space<vmem>>, vector<16x32xf32>
    tpu.vector_store %arg8[%c0_7, %c0_8], %8 {strides = array<i32>} : memref<16x32xf32, #tpu.memory_space<vmem>>, vector<16x32xf32>,
    %c0_i32_9 = arith.constant 0 : i32
    %10 = arith.cmpi eq, %arg2, %c0_i32_9 : i32
    %11 = arith.extui %10 : i1 to i32
    %c0_i32_10 = arith.constant 0 : i32
    %12 = arith.cmpi ne, %11, %c0_i32_10 : i32
    scf.if %12 {
      %c0_11 = arith.constant 0 : index
      %c0_12 = arith.constant 0 : index
      %13 = vector.load %arg8[%c0_11, %c0_12] : memref<16x32xf32, #tpu.memory_space<vmem>>, vector<16x32xf32>
      %c0_13 = arith.constant 0 : index
      %c0_14 = arith.constant 0 : index
      %c0_15 = arith.constant 0 : index
      %14 = vector.load %arg6[%c0_13, %c0_14, %c0_15] : memref<1x1x32xf32, #tpu.memory_space<vmem>>, vector<1x1x32xf32>
      %15 = vector.shape_cast %14 : vector<1x1x32xf32> to vector<1x32xf32>
      %16 = vector.broadcast %15 : vector<1x32xf32> to vector<16x32xf32>
      %17 = arith.addf %13, %16 : vector<16x32xf32>
      %c0_16 = arith.constant 0 : index
      %c0_17 = arith.constant 0 : index
      %18 = vector.load %arg7[%c0_16, %c0_17] : memref<16x32xf32, #tpu.memory_space<vmem>>, vector<16x32xf32>
      tpu.vector_store %arg7[%c0_16, %c0_17], %17 {strides = array<i32>} : memref<16x32xf32, #tpu.memory_space<vmem>>, vector<16x32xf32>,
    } else {
    }
    return
  }
  func.func @transform_0(%arg0: i32, %arg1: i32, %arg2: i32, %arg3: memref<2xi32, #tpu.memory_space<smem>>) -> (i32, i32) {
    %c0_i32 = arith.constant 0 : i32
    return %arg0, %arg2 : i32, i32
  }
  func.func @transform_1(%arg0: i32, %arg1: i32, %arg2: i32, %arg3: memref<2xi32, #tpu.memory_space<smem>>) -> (i32, i32, i32) {
    %0 = arith.index_cast %arg0 : i32 to index
    %1 = memref.load %arg3[%0] : memref<2xi32, #tpu.memory_space<smem>>
    %c0_i32 = arith.constant 0 : i32
    return %1, %arg2, %arg1 : i32, i32, i32
  }
  func.func @transform_2(%arg0: i32, %arg1: i32, %arg2: i32, %arg3: memref<2xi32, #tpu.memory_space<smem>>) -> (i32, i32, i32) {
    %0 = arith.index_cast %arg0 : i32 to index
    %1 = memref.load %arg3[%0] : memref<2xi32, #tpu.memory_space<smem>>
    %c0_i32 = arith.constant 0 : i32
    %c0_i32_0 = arith.constant 0 : i32
    return %1, %c0_i32, %arg1 : i32, i32, i32
  }
  func.func @transform_3(%arg0: i32, %arg1: i32, %arg2: i32, %arg3: memref<2xi32, #tpu.memory_space<smem>>) -> (i32, i32) {
    %c0_i32 = arith.constant 0 : i32
    return %arg0, %arg1 : i32, i32
  }
}

</mosaic_0001>

<bundles_post_ra>
// kernel: sd3_attention.3
= control target key start
LH: loop header
LB: loop body
LE: loop exit
PB: predicated region body
PF: predicated region fallthrough
CT: control target
= control target key end

     0   :  { %s724_s0 = inlined_call_operand.vmem [shape: s32[2], index: 0, kind: input, shape index: {}]   ;;  %s725_s1 = inlined_call_operand.vmem [shape: f32[32,32], index: 1, kind: input, shape index: {}]   ;;  %s726_s2 = inlined_call_operand.vmem [shape: f32[2,32,96], index: 2, kind: input, shape index: {}]   ;;  %s727_s3 = inlined_call_operand.vmem [shape: f32[2,1,96], index: 3, kind: input, shape index: {}]   ;;  %s728_s4 = inlined_call_operand.vmem [shape: f32[32,96], index: 4, kind: output, shape index: {}]  }
   0x1   :  { %s9_s17 = sshll.u32 %s724_s0, 4  ;;  %s10_s17 = int_to_ptr.vmem [resolvable:$true] %s9_s17 }
   0x2   :  { %s597_s18 = scalar_lea.vmem %s10_s17, 16  ;;  %p602_p1 = scmp.lt.s32.totalorder %s10_s17, %s10_s17 }
   0x3   :  { %p598_p0 = scmp.ne.s32.totalorder %s10_s17, %s597_s18  ;;  %p603_p2 = scmp.lt.s32.totalorder %s597_s18, %s597_s18 }
   0x5   :  { %p604_p3 = por %p603_p2, %p602_p1 }
   0x7   :  { %p605_p4 = pnand %p604_p3, %p598_p0 }
   0x9   :  { %608 = shalt.err (!%p605_p4)  }
   0xa   :  { %s635_s19 = smov [#allocation4]  }
   0xb   :  { %12 = dma.vmem_to_smem %s10_s17, 16, %s635_s19, [#allocation3] }
   0xc   :  { %621 = dma.done.wait [#allocation3], 16 }
   0xd   :  { %622 = vsyncadd [#allocation3], 4294967280 }
   0xe   :  { %14 = sfence }
   0xf   :  { %s665_s20 = smov 0   ;;  %s667_s21 = smov 0  }
  0x10   :  { %s669_s22 = smov 0  }
  0x11 LB: > { %s39_s0 = sadd.s32 1, %s629_s21  ;;  %p541_p5 = scmp.ge.s32.totalorder %s633_s22, 1  ;;  %s633_s22 = sphi %s669_s22, %s20_s22   ;;  %s629_s21 = sphi %s667_s21, %s730_s21   ;;  %s625_s20 = sphi %s665_s20, %s729_s20  }
  0x12   : > { %p41_p6 = scmp.ge.s32.totalorder %s39_s0, 2  ;;  %p214_p7 = scmp.lt.s32.totalorder %s633_s22, 3 }
  0x14   : > { %s732_s0 = smov (%p41_p6, %s39_s0), 0  ;;  %p215_p8 = pnand %p541_p5, %p214_p7 }
  0x15   : > { %s273_s23 = sld [smem:[#allocation4 + %s625_s20]] (!%p215_p8)  ;;  %s542_s24 = sshll.u32 (!%p215_p8), %s625_s20, 1 }
  0x16   : > { %218 = sbr.rel (%p215_p8) target bundleno = 249 (0xf9), region = 32  ;;  %p265_p9 = scmp.lt.s32.totalorder (!%p215_p8), %s542_s24, 3 }
  0x17   : > { %s288_s7 = sld [smem:[#allocation4 + %s625_s20]] (!%p215_p8) }
  0x1b   : > { %vm309_vm0 = vcmask 785408   ;;  %v636_v0 = vmov 0.0   ;;  %s734_s24 = smov (!%p265_p9, %s542_s24), 3  ;;  %vm320_vm1 = vcmask 261120   ;;  %p275_p10 = scmp.lt.s32.totalorder %s273_s23, 1 }
  0x1c   : > { %311 = vst.msk [vmem:[#allocation2 + $0x8] sm:$0xff] %vm309_vm0, %v636_v0  ;;  %310 = vst.msk [vmem:[#allocation2] sm:$0xff] %vm309_vm0, %v636_v0  ;;  %s543_s25 = sshll.u32 %s734_s24, 3 }
  0x1d   : > { %s271_s28 = scalar_lea.vmem %s725_s1, %s543_s25  ;;  %s736_s23 = smov (!%p275_p10, %s273_s23), 1 }
  0x1e   : > { %v314_v1 = vld [vmem:[%s271_s28] sm:$0xff]  ;;  %s553_s29 = sshll.u32 %s736_s23, 5  ;;  %v315_v6 = vld [vmem:[%s271_s28 + $0x8] sm:$0xff]  ;;  %p289_p11 = scmp.lt.s32.totalorder %s288_s7, 1 }
  0x1f   : > { %568 = vmatprep.mubr.msk.f32.mxu0 %vm320_vm1, %v314_v1  ;;  %s285_s6 = scalar_lea.vmem %s726_s2, %s553_s29  ;;  %s303_s13 = scalar_lea.vmem %s728_s4, %s543_s25 }
  0x20   : > { %v319_v2 = vld [vmem:[%s285_s6 + $0x18] sm:$0xff]  ;;  %v318_v3 = vld [vmem:[%s285_s6 + $0x10] sm:$0xff]  ;;  %v317_v4 = vld [vmem:[%s285_s6 + $0x8] sm:$0xff]  ;;  %s738_s7 = smov (!%p289_p11, %s288_s7), 1 }
  0x21   : > { %560 = vmatprep.subr.mxu0 %v319_v2  ;;  %v316_v5 = vld [vmem:[%s285_s6] sm:$0xff]  ;;  %s294_s10 = scalar_lea.vmem %s727_s3, %s738_s7 }
  0x22   : > { %561 = vmatpush3.msra.mxu0 %v319_v2  ;;  %v550_v14 = vld [vmem:[%s294_s10] ss:$0 sm:$0xff] }
  0x23   : > { %562 = vmatprep.subr.mxu0 %v318_v3  ;;  %v313_v7 = vld [vmem:[#allocation2 + $0x8] sm:$0xff]  ;;  %v312_v9 = vld [vmem:[#allocation2] sm:$0xff] }
  0x24   : > { %563 = vmatpush3.msra.mxu0 %v318_v3 }
  0x25   : > { %564 = vmatprep.subr.mxu0 %v317_v4 }
  0x26   : > { %565 = vmatpush3.msra.mxu0 %v317_v4 }
  0x27   : > { %566 = vmatprep.subr.mxu0 %v316_v5 }
  0x28   : > { %567 = vmatpush3.msra.mxu0 %v316_v5 }
  0x29   : > { %569 = vmatmul.mubr.msk.f32.vlgmr.msra.gmra.mxu0 %vm320_vm1, %v315_v6 }
  0xe9   : > { %v570_v8 = vpop.f32.mrf.mxu0 }
  0xea   : > { %v403_v10 = vadd.f32 %v570_v8, %v313_v7 }
  0xeb   : > { %v393_v11 = vpop.f32.mrf.mxu0 }
  0xec   : > { %406 = vst.msk [vmem:[#allocation2 + $0x8] sm:$0xff] %vm309_vm0, %v403_v10  ;;  %v402_v12 = vadd.f32 %v393_v11, %v312_v9 }
  0xee   : > { %405 = vst.msk [vmem:[#allocation2] sm:$0xff] %vm309_vm0, %v402_v12 }
  0xf3   : > { %v411_v13 = vld [vmem:[#allocation2 + $0x8] sm:$0xff] }
  0xf4   : > { %v420_v17 = vadd.f32 %v550_v14, %v411_v13 }
  0xf5   : > { %v410_v15 = vld [vmem:[#allocation2] sm:$0xff] }
  0xf6   : > { %v419_v16 = vadd.f32 %v550_v14, %v410_v15  ;;  %422 = vst.msk [vmem:[%s303_s13 + $0x8] sm:$0xff] %vm309_vm0, %v420_v17 }
  0xf8   : > { %421 = vst.msk [vmem:[%s303_s13] sm:$0xff] %vm309_vm0, %v419_v16 }
  0xf9 PF: > { %s20_s22 = sadd.s32 1, %s633_s22   ;;  %s729_s20 = smov %s629_s21 }
  0xfa   : > { %p17_p12 = scmp.ge.s32.totalorder %s20_s22, 4   ;;  %s730_s21 = smov %s732_s0 }
  0xfc   :  { %19 = sbr.rel (!%p17_p12) target bundleno = 17 (0x11), region = 76 }

// kernel: sd3_attention.5
= control target key start
LH: loop header
LB: loop body
LE: loop exit
PB: predicated region body
PF: predicated region fallthrough
CT: control target
= control target key end

     0   :  { %s723_s0 = inlined_call_operand.vmem [shape: s32[2], index: 0, kind: input, shape index: {}]   ;;  %s724_s1 = inlined_call_operand.vmem [shape: f32[32,32], index: 1, kind: input, shape index: {}]   ;;  %s725_s2 = inlined_call_operand.vmem [shape: f32[2,32,32], index: 2, kind: input, shape index: {}]   ;;  %s726_s3 = inlined_call_operand.vmem [shape: f32[2,1,32], index: 3, kind: input, shape index: {}]   ;;  %s727_s4 = inlined_call_operand.vmem [shape: f32[32,32], index: 4, kind: output, shape index: {}]  }
   0x1   :  { %s9_s17 = sshll.u32 %s723_s0, 4  ;;  %s10_s17 = int_to_ptr.vmem [resolvable:$true] %s9_s17 }
   0x2   :  { %s596_s18 = scalar_lea.vmem %s10_s17, 16  ;;  %p601_p1 = scmp.lt.s32.totalorder %s10_s17, %s10_s17 }
   0x3   :  { %p597_p0 = scmp.ne.s32.totalorder %s10_s17, %s596_s18  ;;  %p602_p2 = scmp.lt.s32.totalorder %s596_s18, %s596_s18 }
   0x5   :  { %p603_p3 = por %p602_p2, %p601_p1 }
   0x7   :  { %p604_p4 = pnand %p603_p3, %p597_p0 }
   0x9   :  { %607 = shalt.err (!%p604_p4)  }
   0xa   :  { %s634_s19 = smov [#allocation4]  }
   0xb   :  { %12 = dma.vmem_to_smem %s10_s17, 16, %s634_s19, [#allocation3] }
   0xc   :  { %620 = dma.done.wait [#allocation3], 16 }
   0xd   :  { %621 = vsyncadd [#allocation3], 4294967280 }
   0xe   :  { %14 = sfence }
   0xf   :  { %s664_s20 = smov 0   ;;  %s666_s21 = smov 0  }
  0x10   :  { %s668_s22 = smov 0  }
  0x11 LB: > { %s39_s0 = sadd.s32 1, %s628_s21  ;;  %p540_p5 = scmp.ge.s32.totalorder %s632_s22, 1  ;;  %s632_s22 = sphi %s668_s22, %s20_s22   ;;  %s628_s21 = sphi %s666_s21, %s729_s21   ;;  %s624_s20 = sphi %s664_s20, %s728_s20  }
  0x12   : > { %p41_p6 = scmp.ge.s32.totalorder %s39_s0, 2  ;;  %p214_p7 = scmp.lt.s32.totalorder %s632_s22, 3 }
  0x14   : > { %s731_s0 = smov (%p41_p6, %s39_s0), 0  ;;  %p215_p8 = pnand %p540_p5, %p214_p7 }
  0x15   : > { %s273_s23 = sld [smem:[#allocation4 + %s624_s20]] (!%p215_p8)  ;;  %s541_s24 = sshll.u32 (!%p215_p8), %s624_s20, 1 }
  0x16   : > { %218 = sbr.rel (%p215_p8) target bundleno = 249 (0xf9), region = 32  ;;  %p265_p9 = scmp.lt.s32.totalorder (!%p215_p8), %s541_s24, 3 }
  0x17   : > { %s288_s7 = sld [smem:[#allocation4 + %s624_s20]] (!%p215_p8) }
  0x1b   : > { %vm309_vm0 = vcmask 261120   ;;  %v635_v0 = vmov 0.0   ;;  %s733_s24 = smov (!%p265_p9, %s541_s24), 3  ;;  %p275_p10 = scmp.lt.s32.totalorder %s273_s23, 1 }
  0x1c   : > { %311 = vst.msk [vmem:[#allocation2 + $0x8] sm:$0xff] %vm309_vm0, %v635_v0  ;;  %310 = vst.msk [vmem:[#allocation2] sm:$0xff] %vm309_vm0, %v635_v0  ;;  %s542_s25 = sshll.u32 %s733_s24, 3 }
  0x1d   : > { %s271_s28 = scalar_lea.vmem %s724_s1, %s542_s25  ;;  %s735_s23 = smov (!%p275_p10, %s273_s23), 1 }
  0x1e   : > { %v314_v1 = vld [vmem:[%s271_s28] sm:$0xff]  ;;  %s552_s29 = sshll.u32 %s735_s23, 5  ;;  %v315_v6 = vld [vmem:[%s271_s28 + $0x8] sm:$0xff]  ;;  %p289_p11 = scmp.lt.s32.totalorder %s288_s7, 1 }
  0x1f   : > { %567 = vmatprep.mubr.msk.f32.mxu0 %vm309_vm0, %v314_v1  ;;  %s285_s6 = scalar_lea.vmem %s725_s2, %s552_s29  ;;  %s303_s13 = scalar_lea.vmem %s727_s4, %s542_s25 }
  0x20   : > { %v319_v2 = vld [vmem:[%s285_s6 + $0x18] sm:$0xff]  ;;  %v318_v3 = vld [vmem:[%s285_s6 + $0x10] sm:$0xff]  ;;  %v317_v4 = vld [vmem:[%s285_s6 + $0x8] sm:$0xff]  ;;  %s737_s7 = smov (!%p289_p11, %s288_s7), 1 }
  0x21   : > { %559 = vmatprep.subr.mxu0 %v319_v2  ;;  %v316_v5 = vld [vmem:[%s285_s6] sm:$0xff]  ;;  %s294_s10 = scalar_lea.vmem %s726_s3, %s737_s7 }
  0x22   : > { %560 = vmatpush3.msra.mxu0 %v319_v2  ;;  %v549_v14 = vld [vmem:[%s294_s10] ss:$0 sm:$0xff] }
  0x23   : > { %561 = vmatprep.subr.mxu0 %v318_v3  ;;  %v313_v7 = vld [vmem:[#allocation2 + $0x8] sm:$0xff]  ;;  %v312_v9 = vld [vmem:[#allocation2] sm:$0xff] }
  0x24   : > { %562 = vmatpush3.msra.mxu0 %v318_v3 }
  0x25   : > { %563 = vmatprep.subr.mxu0 %v317_v4 }
  0x26   : > { %564 = vmatpush3.msra.mxu0 %v317_v4 }
  0x27   : > { %565 = vmatprep.subr.mxu0 %v316_v5 }
  0x28   : > { %566 = vmatpush3.msra.mxu0 %v316_v5 }
  0x29   : > { %568 = vmatmul.mubr.msk.f32.vlgmr.msra.gmra.mxu0 %vm309_vm0, %v315_v6 }
  0xe9   : > { %v569_v8 = vpop.f32.mrf.mxu0 }
  0xea   : > { %v403_v10 = vadd.f32 %v569_v8, %v313_v7 }
  0xeb   : > { %v393_v11 = vpop.f32.mrf.mxu0 }
  0xec   : > { %405 = vst.msk [vmem:[#allocation2 + $0x8] sm:$0xff] %vm309_vm0, %v403_v10  ;;  %v402_v12 = vadd.f32 %v393_v11, %v312_v9 }
  0xee   : > { %404 = vst.msk [vmem:[#allocation2] sm:$0xff] %vm309_vm0, %v402_v12 }
  0xf3   : > { %v410_v13 = vld [vmem:[#allocation2 + $0x8] sm:$0xff] }
  0xf4   : > { %v419_v17 = vadd.f32 %v549_v14, %v410_v13 }
  0xf5   : > { %v409_v15 = vld [vmem:[#allocation2] sm:$0xff] }
  0xf6   : > { %v418_v16 = vadd.f32 %v549_v14, %v409_v15  ;;  %421 = vst.msk [vmem:[%s303_s13 + $0x8] sm:$0xff] %vm309_vm0, %v419_v17 }
  0xf8   : > { %420 = vst.msk [vmem:[%s303_s13] sm:$0xff] %vm309_vm0, %v418_v16 }
  0xf9 PF: > { %s20_s22 = sadd.s32 1, %s632_s22   ;;  %s728_s20 = smov %s628_s21 }
  0xfa   : > { %p17_p12 = scmp.ge.s32.totalorder %s20_s22, 4   ;;  %s729_s21 = smov %s731_s0 }
  0xfc   :  { %19 = sbr.rel (!%p17_p12) target bundleno = 17 (0x11), region = 76 }

// kernel: sd3_attention.4
= control target key start
LH: loop header
LB: loop body
LE: loop exit
PB: predicated region body
PF: predicated region fallthrough
CT: control target
= control target key end

     0   :  { %s2033_s12 = smov 0   ;;  %s2035_s13 = smov 0   ;;  %s2657_s0 = inlined_call_operand.vmem [shape: f32[4,128,16], index: 0, kind: input, shape index: {}]   ;;  %s2658_s1 = inlined_call_operand.vmem [shape: f32[4,128,16], index: 1, kind: input, shape index: {}]   ;;  %s2659_s2 = inlined_call_operand.vmem [shape: f32[4,128,16], index: 2, kind: input, shape index: {}]   ;;  %s2660_s3 = inlined_call_operand.vmem [shape: f32[4,128,16], index: 3, kind: output, shape index: {}]  }
   0x1   :  { %s2037_s14 = smov 0  }
   0x2 LB: > { %s32_s15 = sadd.s32 1, %s2004_s13  ;;  %p1638_p0 = scmp.ge.s32.totalorder %s2008_s14, 1  ;;  %s2008_s14 = sphi %s2037_s14, %s13_s14   ;;  %s2004_s13 = sphi %s2035_s13, %s2675_s13   ;;  %s2000_s12 = sphi %s2033_s12, %s2674_s12  }
   0x3   : > { %p34_p1 = scmp.ge.s32.totalorder %s32_s15, 4  ;;  %p199_p2 = scmp.lt.s32.totalorder %s2008_s14, 5 }
   0x5   : > { %s2677_s15 = smov (%p34_p1, %s32_s15), 0  ;;  %p200_p3 = pnand %p1638_p0, %p199_p2 }
   0x6   : > { %p250_p4 = scmp.lt.s32.totalorder (!%p200_p3), %s2000_s12, 3 }
   0x7   : > { %203 = sbr.rel (%p200_p3) target bundleno = 891 (0x37b), region = 32 }
   0xc   : > { %s2679_s12 = smov (!%p250_p4, %s2000_s12), 3  ;;  %vm325_vm0 = vcmask 130048   ;;  %vm342_vm1 = vcmask 7168  }
   0xd   : > { %s2051_s16 = sshll.u32 %s2679_s12, 7 }
   0xe   : > { %s2057_s19 = scalar_lea.vmem %s2658_s1, %s2051_s16  ;;  %s2066_s22 = scalar_lea.vmem %s2657_s0, %s2051_s16 }
   0xf   : > { %v406_v0 = vld [vmem:[%s2057_s19 + $0x78] sm:$0xff]  ;;  %v405_v1 = vld [vmem:[%s2057_s19 + $0x70] sm:$0xff]  ;;  %v404_v2 = vld [vmem:[%s2057_s19 + $0x68] sm:$0xff]  ;;  %s2296_s25 = scalar_lea.vmem %s2659_s2, %s2051_s16  ;;  %s2614_s28 = scalar_lea.vmem %s2660_s3, %s2051_s16 }
  0x10   : > { %1749 = vmatprep.subr.msk.mxu0 %vm325_vm0, %v406_v0  ;;  %v293_v3 = vld [vmem:[%s2066_s22] sm:$0xff]  ;;  %v294_v4 = vld [vmem:[%s2066_s22 + $0x8] sm:$0xff]  ;;  %v295_v8 = vld [vmem:[%s2066_s22 + $0x10] sm:$0xff] }
  0x11   : > { %1750 = vmatpush3.xpose.msk.msra.mxu0 %vm325_vm0, %v406_v0  ;;  %v403_v5 = vld [vmem:[%s2057_s19 + $0x60] sm:$0xff]  ;;  %v309_v6 = vmul.f32 0.25, %v293_v3  ;;  %v310_v7 = vmul.f32 0.25, %v294_v4  ;;  %v296_v9 = vld [vmem:[%s2066_s22 + $0x18] sm:$0xff]  ;;  %v311_v11 = vmul.f32 0.25, %v295_v8  ;;  %v298_v14 = vld [vmem:[%s2066_s22 + $0x28] sm:$0xff] }
  0x12   : > { %1751 = vmatprep.subr.msk.mxu0 %vm325_vm0, %v405_v1  ;;  %v297_v10 = vld [vmem:[%s2066_s22 + $0x20] sm:$0xff]  ;;  %v312_v12 = vmul.f32 0.25, %v296_v9  ;;  %v299_v15 = vld [vmem:[%s2066_s22 + $0x30] sm:$0xff]  ;;  %v300_v16 = vld [vmem:[%s2066_s22 + $0x38] sm:$0xff]  ;;  %v314_v17 = vmul.f32 0.25, %v298_v14 }
  0x13   : > { %v313_v13 = vmul.f32 0.25, %v297_v10  ;;  %326 = vst.msk [vmem:[#allocation2] sm:$0xff] %vm325_vm0, %v309_v6  ;;  %327 = vst.msk [vmem:[#allocation2 + $0x8] sm:$0xff] %vm325_vm0, %v310_v7  ;;  %v315_v18 = vmul.f32 0.25, %v299_v15  ;;  %v316_v19 = vmul.f32 0.25, %v300_v16  ;;  %v301_v20 = vld [vmem:[%s2066_s22 + $0x40] sm:$0xff] }
  0x14   : > { %v302_v21 = vld [vmem:[%s2066_s22 + $0x48] sm:$0xff]  ;;  %v303_v22 = vld [vmem:[%s2066_s22 + $0x50] sm:$0xff]  ;;  %328 = vst.msk [vmem:[#allocation2 + $0x10] sm:$0xff] %vm325_vm0, %v311_v11  ;;  %329 = vst.msk [vmem:[#allocation2 + $0x18] sm:$0xff] %vm325_vm0, %v312_v12  ;;  %v317_v23 = vmul.f32 0.25, %v301_v20 }
  0x15   : > { %1752 = vmatpush3.xpose.msk.msra.mxu0 %vm325_vm0, %v405_v1  ;;  %330 = vst.msk [vmem:[#allocation2 + $0x20] sm:$0xff] %vm325_vm0, %v313_v13  ;;  %v318_v24 = vmul.f32 0.25, %v302_v21  ;;  %v319_v25 = vmul.f32 0.25, %v303_v22  ;;  %v304_v26 = vld [vmem:[%s2066_s22 + $0x58] sm:$0xff]  ;;  %v305_v27 = vld [vmem:[%s2066_s22 + $0x60] sm:$0xff]  ;;  %v306_v28 = vld [vmem:[%s2066_s22 + $0x68] sm:$0xff]  ;;  %v682_v1 = vlaneseq }
  0x16   : > { %1753 = vmatprep.subr.msk.mxu0 %vm325_vm0, %v404_v2  ;;  %331 = vst.msk [vmem:[#allocation2 + $0x28] sm:$0xff] %vm325_vm0, %v314_v17  ;;  %332 = vst.msk [vmem:[#allocation2 + $0x30] sm:$0xff] %vm325_vm0, %v315_v18  ;;  %v320_v29 = vmul.f32 0.25, %v304_v26  ;;  %v321_v30 = vmul.f32 0.25, %v305_v27  ;;  %v322_v31 = vmul.f32 0.25, %v306_v28  ;;  %v307_v32 = vld [vmem:[%s2066_s22 + $0x70] sm:$0xff] }
  0x17   : > { %333 = vst.msk [vmem:[#allocation2 + $0x38] sm:$0xff] %vm325_vm0, %v316_v19  ;;  %v308_v33 = vld [vmem:[%s2066_s22 + $0x78] sm:$0xff]  ;;  %334 = vst.msk [vmem:[#allocation2 + $0x40] sm:$0xff] %vm325_vm0, %v317_v23  ;;  %v323_v34 = vmul.f32 0.25, %v307_v32  ;;  %v401_v38 = vld [vmem:[%s2057_s19 + $0x50] sm:$0xff]  ;;  %v2011_v19 = vmov 0  }
  0x18   : > { %335 = vst.msk [vmem:[#allocation2 + $0x48] sm:$0xff] %vm325_vm0, %v318_v24  ;;  %336 = vst.msk [vmem:[#allocation2 + $0x50] sm:$0xff] %vm325_vm0, %v319_v25  ;;  %v324_v35 = vmul.f32 0.25, %v308_v33  ;;  %v402_v36 = vld [vmem:[%s2057_s19 + $0x58] sm:$0xff]  ;;  %v400_v39 = vld [vmem:[%s2057_s19 + $0x48] sm:$0xff]  ;;  %1888 = vset.pattern.permute.xlu0 %v2011_v19  ;;  %1889 = vset.pattern.permute.xlu1 %v2011_v19  ;;  %v2012_v32 = vmov 0.0  }
  0x19   : > { %1754 = vmatpush3.xpose.msk.msra.mxu0 %vm325_vm0, %v404_v2  ;;  %337 = vst.msk [vmem:[#allocation2 + $0x58] sm:$0xff] %vm325_vm0, %v320_v29  ;;  %338 = vst.msk [vmem:[#allocation2 + $0x60] sm:$0xff] %vm325_vm0, %v321_v30  ;;  %v399_v40 = vld [vmem:[%s2057_s19 + $0x40] sm:$0xff]  ;;  %v398_v41 = vld [vmem:[%s2057_s19 + $0x38] sm:$0xff]  ;;  %v2010_v0 = vmov -1e+30  }
  0x1a   : > { %1755 = vmatprep.subr.msk.mxu0 %vm325_vm0, %v403_v5  ;;  %339 = vst.msk [vmem:[#allocation2 + $0x68] sm:$0xff] %vm325_vm0, %v322_v31  ;;  %340 = vst.msk [vmem:[#allocation2 + $0x70] sm:$0xff] %vm325_vm0, %v323_v34  ;;  %v423_v37 = vld [vmem:[#allocation2] sm:$0xff]  ;;  %v397_v42 = vld [vmem:[%s2057_s19 + $0x30] sm:$0xff]  ;;  %v2177_v2 = vand.u32 127, %v682_v1 }
  0x1b   : > { %341 = vst.msk [vmem:[#allocation2 + $0x78] sm:$0xff] %vm325_vm0, %v324_v35  ;;  %1781 = vmatprep.mubr.msk.f32.mxu0 %vm325_vm0, %v423_v37  ;;  %v396_v43 = vld [vmem:[%s2057_s19 + $0x28] sm:$0xff]  ;;  %v395_v44 = vld [vmem:[%s2057_s19 + $0x20] sm:$0xff]  ;;  %v394_v45 = vld [vmem:[%s2057_s19 + $0x18] sm:$0xff] }
  0x1c   : > { %v393_v46 = vld [vmem:[%s2057_s19 + $0x10] sm:$0xff]  ;;  %v392_v47 = vld [vmem:[%s2057_s19 + $0x8] sm:$0xff]  ;;  %v391_v48 = vld [vmem:[%s2057_s19] sm:$0xff]  ;;  %343 = vst.msk [vmem:[#allocation3] sm:$0xff] %vm342_vm1, %v2010_v0  ;;  %vm686_vm2 = vcmp.lt.s32.totalorder %v2177_v2, 16 }
  0x1d   : > { %1756 = vmatpush3.xpose.msk.msra.mxu0 %vm325_vm0, %v403_v5  ;;  %v424_v49 = vld [vmem:[#allocation2 + $0x8] sm:$0xff]  ;;  %v425_v50 = vld [vmem:[#allocation2 + $0x10] sm:$0xff]  ;;  %v426_v51 = vld [vmem:[#allocation2 + $0x18] sm:$0xff]  ;;  %344 = vst.msk [vmem:[#allocation3 + $0x8] sm:$0xff] %vm342_vm1, %v2010_v0 }
  0x1e   : > { %1757 = vmatprep.subr.msk.mxu0 %vm325_vm0, %v402_v36  ;;  %v427_v52 = vld [vmem:[#allocation2 + $0x20] sm:$0xff]  ;;  %v428_v53 = vld [vmem:[#allocation2 + $0x28] sm:$0xff]  ;;  %v429_v54 = vld [vmem:[#allocation2 + $0x30] sm:$0xff]  ;;  %345 = vst.msk [vmem:[#allocation3 + $0x10] sm:$0xff] %vm342_vm1, %v2010_v0 }
  0x1f   : > { %v430_v55 = vld [vmem:[#allocation2 + $0x38] sm:$0xff]  ;;  %v431_v56 = vld [vmem:[#allocation2 + $0x40] sm:$0xff]  ;;  %v432_v57 = vld [vmem:[#allocation2 + $0x48] sm:$0xff]  ;;  %346 = vst.msk [vmem:[#allocation3 + $0x18] sm:$0xff] %vm342_vm1, %v2010_v0 }
  0x20   : > { %v433_v58 = vld [vmem:[#allocation2 + $0x50] sm:$0xff]  ;;  %v434_v59 = vld [vmem:[#allocation2 + $0x58] sm:$0xff]  ;;  %v435_v60 = vld [vmem:[#allocation2 + $0x60] sm:$0xff]  ;;  %347 = vst.msk [vmem:[#allocation3 + $0x20] sm:$0xff] %vm342_vm1, %v2010_v0 }
  0x21   : > { %1758 = vmatpush3.xpose.msk.msra.mxu0 %vm325_vm0, %v402_v36  ;;  %v436_v61 = vld [vmem:[#allocation2 + $0x68] sm:$0xff]  ;;  %v437_v62 = vld [vmem:[#allocation2 + $0x70] sm:$0xff]  ;;  %348 = vst.msk [vmem:[#allocation3 + $0x28] sm:$0xff] %vm342_vm1, %v2010_v0  ;;  %349 = vst.msk [vmem:[#allocation3 + $0x30] sm:$0xff] %vm342_vm1, %v2010_v0 }
  0x22   : > { %1759 = vmatprep.subr.msk.mxu0 %vm325_vm0, %v401_v38  ;;  %v438_v63 = vld [vmem:[#allocation2 + $0x78] sm:$0xff]  ;;  %350 = vst.msk [vmem:[#allocation3 + $0x38] sm:$0xff] %vm342_vm1, %v2010_v0  ;;  %351 = vst.msk [vmem:[#allocation3 + $0x40] sm:$0xff] %vm342_vm1, %v2010_v0  ;;  %v412_v1 = vld [vmem:[%s2296_s25 + $0x28] sm:$0xff] }
  0x23   : > { %352 = vst.msk [vmem:[#allocation3 + $0x48] sm:$0xff] %vm342_vm1, %v2010_v0  ;;  %353 = vst.msk [vmem:[#allocation3 + $0x50] sm:$0xff] %vm342_vm1, %v2010_v0  ;;  %v422_v37 = vld [vmem:[%s2296_s25 + $0x78] sm:$0xff] }
  0x24   : > { %354 = vst.msk [vmem:[#allocation3 + $0x58] sm:$0xff] %vm342_vm1, %v2010_v0  ;;  %355 = vst.msk [vmem:[#allocation3 + $0x60] sm:$0xff] %vm342_vm1, %v2010_v0  ;;  %1805 = vmatprep.subr.mxu1 %v422_v37  ;;  %v410_v19 = vld [vmem:[%s2296_s25 + $0x18] sm:$0xff] }
  0x25   : > { %1760 = vmatpush3.xpose.msk.msra.mxu0 %vm325_vm0, %v401_v38  ;;  %356 = vst.msk [vmem:[#allocation3 + $0x68] sm:$0xff] %vm342_vm1, %v2010_v0  ;;  %357 = vst.msk [vmem:[#allocation3 + $0x70] sm:$0xff] %vm342_vm1, %v2010_v0  ;;  %v421_v38 = vld [vmem:[%s2296_s25 + $0x70] sm:$0xff]  ;;  %1806 = vmatpush3.msra.mxu1 %v422_v37  ;;  %v408_v37 = vld [vmem:[%s2296_s25 + $0x8] sm:$0xff] }
  0x26   : > { %1761 = vmatprep.subr.msk.mxu0 %vm325_vm0, %v400_v39  ;;  %358 = vst.msk [vmem:[#allocation3 + $0x78] sm:$0xff] %vm342_vm1, %v2010_v0  ;;  %359 = vst.msk [vmem:[#allocation4] sm:$0xff] %vm342_vm1, %v2012_v32  ;;  %1807 = vmatprep.subr.mxu1 %v421_v38 }
  0x27   : > { %360 = vst.msk [vmem:[#allocation4 + $0x8] sm:$0xff] %vm342_vm1, %v2012_v32  ;;  %361 = vst.msk [vmem:[#allocation4 + $0x10] sm:$0xff] %vm342_vm1, %v2012_v32  ;;  %1808 = vmatpush3.msra.mxu1 %v421_v38 }
  0x28   : > { %362 = vst.msk [vmem:[#allocation4 + $0x18] sm:$0xff] %vm342_vm1, %v2012_v32  ;;  %363 = vst.msk [vmem:[#allocation4 + $0x20] sm:$0xff] %vm342_vm1, %v2012_v32 }
  0x29   : > { %1762 = vmatpush3.xpose.msk.msra.mxu0 %vm325_vm0, %v400_v39  ;;  %364 = vst.msk [vmem:[#allocation4 + $0x28] sm:$0xff] %vm342_vm1, %v2012_v32  ;;  %365 = vst.msk [vmem:[#allocation4 + $0x30] sm:$0xff] %vm342_vm1, %v2012_v32  ;;  %v420_v39 = vld [vmem:[%s2296_s25 + $0x68] sm:$0xff] }
  0x2a   : > { %1763 = vmatprep.subr.msk.mxu0 %vm325_vm0, %v399_v40  ;;  %366 = vst.msk [vmem:[#allocation4 + $0x38] sm:$0xff] %vm342_vm1, %v2012_v32  ;;  %367 = vst.msk [vmem:[#allocation4 + $0x40] sm:$0xff] %vm342_vm1, %v2012_v32  ;;  %1809 = vmatprep.subr.mxu1 %v420_v39 }
  0x2b   : > { %368 = vst.msk [vmem:[#allocation4 + $0x48] sm:$0xff] %vm342_vm1, %v2012_v32  ;;  %369 = vst.msk [vmem:[#allocation4 + $0x50] sm:$0xff] %vm342_vm1, %v2012_v32  ;;  %1810 = vmatpush3.msra.mxu1 %v420_v39 }
  0x2c   : > { %370 = vst.msk [vmem:[#allocation4 + $0x58] sm:$0xff] %vm342_vm1, %v2012_v32  ;;  %371 = vst.msk [vmem:[#allocation4 + $0x60] sm:$0xff] %vm342_vm1, %v2012_v32 }
  0x2d   : > { %1764 = vmatpush3.xpose.msk.msra.mxu0 %vm325_vm0, %v399_v40  ;;  %372 = vst.msk [vmem:[#allocation4 + $0x68] sm:$0xff] %vm342_vm1, %v2012_v32  ;;  %373 = vst.msk [vmem:[#allocation4 + $0x70] sm:$0xff] %vm342_vm1, %v2012_v32  ;;  %v419_v40 = vld [vmem:[%s2296_s25 + $0x60] sm:$0xff] }
  0x2e   : > { %1765 = vmatprep.subr.msk.mxu0 %vm325_vm0, %v398_v41  ;;  %374 = vst.msk [vmem:[#allocation4 + $0x78] sm:$0xff] %vm342_vm1, %v2012_v32  ;;  %1811 = vmatprep.subr.mxu1 %v419_v40 }
  0x2f   : > { %375 = vst.msk [vmem:[#allocation5] sm:$0xff] %vm325_vm0, %v2012_v32  ;;  %376 = vst.msk [vmem:[#allocation5 + $0x8] sm:$0xff] %vm325_vm0, %v2012_v32  ;;  %1812 = vmatpush3.msra.mxu1 %v419_v40 }
  0x30   : > { %377 = vst.msk [vmem:[#allocation5 + $0x10] sm:$0xff] %vm325_vm0, %v2012_v32  ;;  %378 = vst.msk [vmem:[#allocation5 + $0x18] sm:$0xff] %vm325_vm0, %v2012_v32 }
  0x31   : > { %1766 = vmatpush3.xpose.msk.msra.mxu0 %vm325_vm0, %v398_v41  ;;  %379 = vst.msk [vmem:[#allocation5 + $0x20] sm:$0xff] %vm325_vm0, %v2012_v32  ;;  %380 = vst.msk [vmem:[#allocation5 + $0x28] sm:$0xff] %vm325_vm0, %v2012_v32  ;;  %v418_v41 = vld [vmem:[%s2296_s25 + $0x58] sm:$0xff] }
  0x32   : > { %1767 = vmatprep.subr.msk.mxu0 %vm325_vm0, %v397_v42  ;;  %381 = vst.msk [vmem:[#allocation5 + $0x30] sm:$0xff] %vm325_vm0, %v2012_v32  ;;  %382 = vst.msk [vmem:[#allocation5 + $0x38] sm:$0xff] %vm325_vm0, %v2012_v32  ;;  %1813 = vmatprep.subr.mxu1 %v418_v41 }
  0x33   : > { %383 = vst.msk [vmem:[#allocation5 + $0x40] sm:$0xff] %vm325_vm0, %v2012_v32  ;;  %384 = vst.msk [vmem:[#allocation5 + $0x48] sm:$0xff] %vm325_vm0, %v2012_v32  ;;  %1814 = vmatpush3.msra.mxu1 %v418_v41  ;;  %v2396_v41 = vld [vmem:[#allocation3 + $0x50] sm:$0xff] }
  0x34   : > { %385 = vst.msk [vmem:[#allocation5 + $0x50] sm:$0xff] %vm325_vm0, %v2012_v32  ;;  %386 = vst.msk [vmem:[#allocation5 + $0x58] sm:$0xff] %vm325_vm0, %v2012_v32 }
  0x35   : > { %1768 = vmatpush3.xpose.msk.msra.mxu0 %vm325_vm0, %v397_v42  ;;  %387 = vst.msk [vmem:[#allocation5 + $0x60] sm:$0xff] %vm325_vm0, %v2012_v32  ;;  %388 = vst.msk [vmem:[#allocation5 + $0x68] sm:$0xff] %vm325_vm0, %v2012_v32  ;;  %v2303_v42 = vld [vmem:[#allocation3] sm:$0xff] }
  0x36   : > { %1769 = vmatprep.subr.msk.mxu0 %vm325_vm0, %v396_v43  ;;  %389 = vst.msk [vmem:[#allocation5 + $0x70] sm:$0xff] %vm325_vm0, %v2012_v32  ;;  %390 = vst.msk [vmem:[#allocation5 + $0x78] sm:$0xff] %vm325_vm0, %v2012_v32 }
  0x39   : > { %1770 = vmatpush3.xpose.msk.msra.mxu0 %vm325_vm0, %v396_v43  ;;  %v417_v43 = vld [vmem:[%s2296_s25 + $0x50] sm:$0xff] }
  0x3a   : > { %1771 = vmatprep.subr.msk.mxu0 %vm325_vm0, %v395_v44  ;;  %1815 = vmatprep.subr.mxu1 %v417_v43 }
  0x3b   : > { %1816 = vmatpush3.msra.mxu1 %v417_v43  ;;  %v407_v43 = vld [vmem:[%s2296_s25] sm:$0xff] }
  0x3d   : > { %1772 = vmatpush3.xpose.msk.msra.mxu0 %vm325_vm0, %v395_v44 }
  0x3e   : > { %1773 = vmatprep.subr.msk.mxu0 %vm325_vm0, %v394_v45 }
  0x41   : > { %1774 = vmatpush3.xpose.msk.msra.mxu0 %vm325_vm0, %v394_v45  ;;  %v2306_v45 = vld [vmem:[#allocation3 + $0x18] sm:$0xff] }
  0x42   : > { %1775 = vmatprep.subr.msk.mxu0 %vm325_vm0, %v393_v46 }
  0x45   : > { %1776 = vmatpush3.xpose.msk.msra.mxu0 %vm325_vm0, %v393_v46  ;;  %v416_v46 = vld [vmem:[%s2296_s25 + $0x48] sm:$0xff] }
  0x46   : > { %1777 = vmatprep.subr.msk.mxu0 %vm325_vm0, %v392_v47  ;;  %1817 = vmatprep.subr.mxu1 %v416_v46 }
  0x47   : > { %1818 = vmatpush3.msra.mxu1 %v416_v46 }
  0x49   : > { %1778 = vmatpush3.xpose.msk.msra.mxu0 %vm325_vm0, %v392_v47 }
  0x4a   : > { %1779 = vmatprep.subr.msk.mxu0 %vm325_vm0, %v391_v48 }
  0x4d   : > { %1780 = vmatpush3.xpose.msk.msra.mxu0 %vm325_vm0, %v391_v48 }
  0x50   : > { %1782 = vmatmul.mubr.msk.f32.vlgmr.msra.gmra.mxu0 %vm325_vm0, %v424_v49  ;;  %v2312_v49 = vld [vmem:[#allocation3 + $0x8] sm:$0xff] }
  0x51   : > { %1784 = vmatprep.mubr.msk.f32.mxu0 %vm325_vm0, %v425_v50  ;;  %v415_v50 = vld [vmem:[%s2296_s25 + $0x40] sm:$0xff] }
  0x52   : > { %1819 = vmatprep.subr.mxu1 %v415_v50 }
  0x53   : > { %1820 = vmatpush3.msra.mxu1 %v415_v50 }
  0x54   : > { %1785 = vmatmul.mubr.msk.f32.gmra.mxu0 %vm325_vm0, %v426_v51 }
  0x55   : > { %1787 = vmatprep.mubr.msk.f32.mxu0 %vm325_vm0, %v427_v52 }
  0x58   : > { %1788 = vmatmul.mubr.msk.f32.gmra.mxu0 %vm325_vm0, %v428_v53 }
  0x59   : > { %1790 = vmatprep.mubr.msk.f32.mxu0 %vm325_vm0, %v429_v54  ;;  %v2323_v54 = vld [vmem:[#allocation3 + $0x10] sm:$0xff] }
  0x5c   : > { %1791 = vmatmul.mubr.msk.f32.gmra.mxu0 %vm325_vm0, %v430_v55  ;;  %v414_v55 = vld [vmem:[%s2296_s25 + $0x38] sm:$0xff] }
  0x5d   : > { %1793 = vmatprep.mubr.msk.f32.mxu0 %vm325_vm0, %v431_v56  ;;  %1821 = vmatprep.subr.mxu1 %v414_v55 }
  0x5e   : > { %1822 = vmatpush3.msra.mxu1 %v414_v55 }
  0x60   : > { %1794 = vmatmul.mubr.msk.f32.gmra.mxu0 %vm325_vm0, %v432_v57 }
  0x61   : > { %1796 = vmatprep.mubr.msk.f32.mxu0 %vm325_vm0, %v433_v58 }
  0x64   : > { %1797 = vmatmul.mubr.msk.f32.gmra.mxu0 %vm325_vm0, %v434_v59  ;;  %v2333_v59 = vld [vmem:[#allocation3 + $0x20] sm:$0xff] }
  0x65   : > { %1799 = vmatprep.mubr.msk.f32.mxu0 %vm325_vm0, %v435_v60  ;;  %v413_v60 = vld [vmem:[%s2296_s25 + $0x30] sm:$0xff] }
  0x66   : > { %1823 = vmatprep.subr.mxu1 %v413_v60 }
  0x67   : > { %1824 = vmatpush3.msra.mxu1 %v413_v60  ;;  %v2417_v60 = vld [vmem:[#allocation3 + $0x60] sm:$0xff] }
  0x68   : > { %1800 = vmatmul.mubr.msk.f32.gmra.mxu0 %vm325_vm0, %v436_v61  ;;  %1825 = vmatprep.subr.mxu1 %v412_v1 }
  0x69   : > { %1802 = vmatprep.mubr.msk.f32.mxu0 %vm325_vm0, %v437_v62  ;;  %1826 = vmatpush3.msra.mxu1 %v412_v1 }
  0x6c   : > { %1803 = vmatmul.mubr.msk.f32.gmra.mxu0 %vm325_vm0, %v438_v63  ;;  %v2344_v63 = vld [vmem:[#allocation3 + $0x28] sm:$0xff] }
 0x110   : > { %v1783_v3 = vpop.f32.mrf.mxu0 }
 0x111   : > { %v2192_v9 = vsel %vm686_vm2, %v1783_v3, -1e+30 }
 0x112   : > { %v602_v4 = vpop.f32.mrf.mxu0 }
 0x113   : > { %v2182_v5 = vsel %vm686_vm2, %v602_v4, -1e+30 }
 0x114   : > { %719 = vmax.xlane.f32.xlu0 %v2182_v5  ;;  %v1786_v6 = vpop.f32.mrf.mxu0 }
 0x115   : > { %v2187_v7 = vsel %vm686_vm2, %v1786_v6, -1e+30  ;;  %v2354_v6 = vld [vmem:[#allocation3 + $0x30] sm:$0xff] }
 0x116   : > { %725 = vmax.xlane.f32.xlu1 %v2187_v7  ;;  %v612_v8 = vpop.f32.mrf.mxu0 }
 0x117   : > { %v2196_v10 = vsel %vm686_vm2, %v612_v8, -1e+30  ;;  %v411_v8 = vld [vmem:[%s2296_s25 + $0x20] sm:$0xff] }
 0x118   : > { %721 = vmax.xlane.f32.xlu0 %v2192_v9  ;;  %v1789_v11 = vpop.f32.mrf.mxu0  ;;  %1827 = vmatprep.subr.mxu1 %v411_v8 }
 0x119   : > { %v2202_v13 = vsel %vm686_vm2, %v1789_v11, -1e+30  ;;  %1828 = vmatpush3.msra.mxu1 %v411_v8 }
 0x11a   : > { %723 = vmax.xlane.f32.xlu1 %v2196_v10  ;;  %v622_v12 = vpop.f32.mrf.mxu0  ;;  %1829 = vmatprep.subr.mxu1 %v410_v19 }
 0x11b   : > { %v2206_v14 = vsel %vm686_vm2, %v622_v12, -1e+30  ;;  %1830 = vmatpush3.msra.mxu1 %v410_v19 }
 0x11c   : > { %v1792_v15 = vpop.f32.mrf.mxu0  ;;  %727 = vmax.xlane.f32.xlu0 %v2206_v14 }
 0x11d   : > { %v2212_v17 = vsel %vm686_vm2, %v1792_v15, -1e+30  ;;  %v2365_v15 = vld [vmem:[#allocation3 + $0x38] sm:$0xff] }
 0x11e   : > { %729 = vmax.xlane.f32.xlu1 %v2202_v13  ;;  %v632_v16 = vpop.f32.mrf.mxu0 }
 0x11f   : > { %v2216_v18 = vsel %vm686_vm2, %v632_v16, -1e+30 }
 0x120   : > { %v1795_v20 = vpop.f32.mrf.mxu0  ;;  %731 = vmax.xlane.f32.xlu0 %v2216_v18 }
 0x121   : > { %v2222_v22 = vsel %vm686_vm2, %v1795_v20, -1e+30 }
 0x122   : > { %733 = vmax.xlane.f32.xlu1 %v2212_v17  ;;  %v642_v21 = vpop.f32.mrf.mxu0 }
 0x123   : > { %v2226_v23 = vsel %vm686_vm2, %v642_v21, -1e+30 }
 0x124   : > { %v1798_v24 = vpop.f32.mrf.mxu0  ;;  %735 = vmax.xlane.f32.xlu0 %v2226_v23 }
 0x125   : > { %v2232_v26 = vsel %vm686_vm2, %v1798_v24, -1e+30 }
 0x126   : > { %737 = vmax.xlane.f32.xlu1 %v2222_v22  ;;  %v652_v25 = vpop.f32.mrf.mxu0 }
 0x127   : > { %v2236_v27 = vsel %vm686_vm2, %v652_v25, -1e+30  ;;  %v2375_v25 = vld [vmem:[#allocation3 + $0x40] sm:$0xff] }
 0x128   : > { %v1801_v28 = vpop.f32.mrf.mxu0  ;;  %739 = vmax.xlane.f32.xlu0 %v2236_v27 }
 0x129   : > { %v2242_v30 = vsel %vm686_vm2, %v1801_v28, -1e+30  ;;  %v409_v28 = vld [vmem:[%s2296_s25 + $0x10] sm:$0xff] }
 0x12a   : > { %741 = vmax.xlane.f32.xlu1 %v2232_v26  ;;  %v662_v29 = vpop.f32.mrf.mxu0  ;;  %1831 = vmatprep.subr.mxu1 %v409_v28 }
 0x12b   : > { %v2246_v31 = vsel %vm686_vm2, %v662_v29, -1e+30  ;;  %1832 = vmatpush3.msra.mxu1 %v409_v28  ;;  %v2437_v28 = vld [vmem:[#allocation3 + $0x70] sm:$0xff] }
 0x12c   : > { %v1804_v33 = vpop.f32.mrf.mxu0  ;;  %743 = vmax.xlane.f32.xlu0 %v2246_v31  ;;  %1833 = vmatprep.subr.mxu1 %v408_v37 }
 0x12d   : > { %v2284_v35 = vsel %vm686_vm2, %v1804_v33, -1e+30  ;;  %v2386_v33 = vld [vmem:[#allocation3 + $0x48] sm:$0xff]  ;;  %1834 = vmatpush3.msra.mxu1 %v408_v37 }
 0x12e   : > { %745 = vmax.xlane.f32.xlu1 %v2242_v30  ;;  %v672_v34 = vpop.f32.mrf.mxu0  ;;  %1835 = vmatprep.subr.mxu1 %v407_v43 }
 0x12f   : > { %v2288_v36 = vsel %vm686_vm2, %v672_v34, -1e+30  ;;  %1836 = vmatpush3.msra.mxu1 %v407_v43 }
 0x130   : > { %747 = vmax.xlane.f32.xlu0 %v2288_v36 }
 0x132   : > { %749 = vmax.xlane.f32.xlu1 %v2284_v35 }
 0x19d   : > { %v720_v44 = vpop.xlane.xlu0 %719 }
 0x19e   : > { %v2310_v47 = vmax.f32 %v2303_v42, %v720_v44 }
 0x19f   : > { %v726_v48 = vpop.xlane.xlu1 %725 }
 0x1a0   : > { %v767_v51 = vsub.f32 %v2303_v42, %v2310_v47  ;;  %1329 = vst.msk [vmem:[#allocation3] sm:$0xff] %vm342_vm1, %v2310_v47  ;;  %v2320_v52 = vmax.f32 %v2306_v45, %v726_v48  ;;  %817 = vperm.xlu0 %1888, %v2310_v47   ;;  %v2407_v48 = vld [vmem:[#allocation3 + $0x58] sm:$0xff] }
 0x1a1   : > { %v722_v53 = vpop.xlane.xlu0 %721 }
 0x1a2   : > { %1332 = vst.msk [vmem:[#allocation3 + $0x18] sm:$0xff] %vm342_vm1, %v2320_v52  ;;  %v2331_v57 = vmax.f32 %v2312_v49, %v722_v53 }
 0x1a3   : > { %v724_v58 = vpop.xlane.xlu1 %723 }
 0x1a4   : > { %v768_v61 = vsub.f32 %v2312_v49, %v2331_v57  ;;  %1330 = vst.msk [vmem:[#allocation3 + $0x8] sm:$0xff] %vm342_vm1, %v2331_v57  ;;  %v2341_v62 = vmax.f32 %v2323_v54, %v724_v58  ;;  %822 = vperm.xlu1 %1889, %v2331_v57  }
 0x1a5   : > { %v728_v0 = vpop.xlane.xlu0 %727 }
 0x1a6   : > { %v769_v2 = vsub.f32 %v2323_v54, %v2341_v62  ;;  %1331 = vst.msk [vmem:[#allocation3 + $0x10] sm:$0xff] %vm342_vm1, %v2341_v62  ;;  %v2352_v3 = vmax.f32 %v2333_v59, %v728_v0 }
 0x1a7   : > { %v730_v4 = vpop.xlane.xlu1 %729 }
 0x1a8   : > { %v2358_v11 = vmax.f32 %v2344_v63, %v730_v4  ;;  %832 = vperm.xlu1 %1889, %v2320_v52   ;;  %1333 = vst.msk [vmem:[#allocation3 + $0x20] sm:$0xff] %vm342_vm1, %v2352_v3  ;;  %v2427_v4 = vld [vmem:[#allocation3 + $0x68] sm:$0xff]  ;;  %v2661_v49 = vsub.f32 %v2333_v59, %v2352_v3 }
 0x1a9   : > { %v732_v16 = vpop.xlane.xlu0 %731 }
 0x1aa   : > { %1334 = vst.msk [vmem:[#allocation3 + $0x28] sm:$0xff] %vm342_vm1, %v2358_v11  ;;  %v2373_v21 = vmax.f32 %v2354_v6, %v732_v16  ;;  %v791_v57 = vmul.f32 1.442695, %v2661_v49  ;;  %v2664_v42 = vsub.f32 %v2344_v63, %v2358_v11 }
 0x1ab   : > { %v734_v24 = vpop.xlane.xlu1 %733 }
 0x1ac   : > { %v2379_v29 = vmax.f32 %v2365_v15, %v734_v24  ;;  %827 = vperm.xlu1 %1889, %v2341_v62   ;;  %1335 = vst.msk [vmem:[#allocation3 + $0x30] sm:$0xff] %vm342_vm1, %v2373_v21  ;;  %v2663_v54 = vsub.f32 %v2354_v6, %v2373_v21  ;;  %v793_v47 = vmul.f32 1.442695, %v2664_v42 }
 0x1ad   : > { %v736_v34 = vpop.xlane.xlu0 %735 }
 0x1ae   : > { %1336 = vst.msk [vmem:[#allocation3 + $0x38] sm:$0xff] %vm342_vm1, %v2379_v29  ;;  %v2394_v39 = vmax.f32 %v2375_v25, %v736_v34  ;;  %v795_v62 = vmul.f32 1.442695, %v2663_v54  ;;  %v950_v54 = vld [vmem:[#allocation4 + $0x38] sm:$0xff] }
 0x1af   : > { %v738_v40 = vpop.xlane.xlu1 %737 }
 0x1b0   : > { %v2400_v44 = vmax.f32 %v2386_v33, %v738_v40  ;;  %842 = vperm.xlu1 %1889, %v2358_v11   ;;  %1337 = vst.msk [vmem:[#allocation3 + $0x40] sm:$0xff] %vm342_vm1, %v2394_v39  ;;  %v2447_v40 = vld [vmem:[#allocation3 + $0x78] sm:$0xff] }
 0x1b1   : > { %v740_v50 = vpop.xlane.xlu0 %739 }
 0x1b2   : > { %1338 = vst.msk [vmem:[#allocation3 + $0x48] sm:$0xff] %vm342_vm1, %v2400_v44  ;;  %862 = vperm.xlu0 %1888, %v2400_v44   ;;  %v2415_v55 = vmax.f32 %v2396_v41, %v740_v50  ;;  %v2668_v63 = vsub.f32 %v2386_v33, %v2400_v44 }
 0x1b3   : > { %v742_v58 = vpop.xlane.xlu1 %741 }
 0x1b4   : > { %v2420_v0 = vmax.f32 %v2407_v48, %v742_v58  ;;  %837 = vperm.xlu1 %1889, %v2352_v3   ;;  %1339 = vst.msk [vmem:[#allocation3 + $0x50] sm:$0xff] %vm342_vm1, %v2415_v55  ;;  %v2667_v3 = vsub.f32 %v2396_v41, %v2415_v55  ;;  %v801_v11 = vmul.f32 1.442695, %v2668_v63 }
 0x1b5   : > { %v744_v8 = vpop.xlane.xlu0 %743 }
 0x1b6   : > { %1340 = vst.msk [vmem:[#allocation3 + $0x58] sm:$0xff] %vm342_vm1, %v2420_v0  ;;  %872 = vperm.xlu0 %1888, %v2420_v0   ;;  %v2435_v19 = vmax.f32 %v2417_v60, %v744_v8  ;;  %v803_v6 = vmul.f32 1.442695, %v2667_v3 }
 0x1b7   : > { %v746_v24 = vpop.xlane.xlu1 %745 }
 0x1b8   : > { %v2440_v34 = vmax.f32 %v2427_v4, %v746_v24  ;;  %852 = vperm.xlu1 %1889, %v2379_v29   ;;  %1341 = vst.msk [vmem:[#allocation3 + $0x60] sm:$0xff] %vm342_vm1, %v2435_v19 }
 0x1b9   : > { %v748_v43 = vpop.xlane.xlu0 %747 }
 0x1ba   : > { %1342 = vst.msk [vmem:[#allocation3 + $0x68] sm:$0xff] %vm342_vm1, %v2440_v34  ;;  %882 = vperm.xlu0 %1888, %v2440_v34   ;;  %v2455_v58 = vmax.f32 %v2437_v28, %v748_v43 }
 0x1bb   : > { %v750_v8 = vpop.xlane.xlu1 %749 }
 0x1bc   : > { %v2458_v24 = vmax.f32 %v2447_v40, %v750_v8  ;;  %847 = vperm.xlu1 %1889, %v2373_v21   ;;  %1343 = vst.msk [vmem:[#allocation3 + $0x70] sm:$0xff] %vm342_vm1, %v2455_v58  ;;  %v2671_v33 = vsub.f32 %v2437_v28, %v2455_v58 }
 0x1be   : > { %1344 = vst.msk [vmem:[#allocation3 + $0x78] sm:$0xff] %vm342_vm1, %v2458_v24  ;;  %892 = vperm.xlu0 %1888, %v2458_v24   ;;  %v811_v44 = vmul.f32 1.442695, %v2671_v33  ;;  %v2673_v28 = vsub.f32 %v2447_v40, %v2458_v24 }
 0x1c0   : > { %857 = vperm.xlu1 %1889, %v2394_v39  }
 0x1c4   : > { %867 = vperm.xlu1 %1889, %v2415_v55  }
 0x1c8   : > { %877 = vperm.xlu1 %1889, %v2435_v19  }
 0x1cc   : > { %887 = vperm.xlu1 %1889, %v2455_v58   ;;  %v813_v58 = vmul.f32 1.442695, %v2673_v28 }
 0x21b   : > { %v818_v43 = vpop.permute.xlu0 %817 }
 0x21c   : > { %v895_v8 = vsub.f32 %v2182_v5, %v818_v43 }
 0x21e   : > { %v911_v16 = vmul.f32 1.442695, %v895_v8 }
 0x21f   : > { %v823_v37 = vpop.permute.xlu1 %822 }
 0x220   : > { %1890 = vpow2.f32 %v911_v16  ;;  %v896_v50 = vsub.f32 %v2192_v9, %v823_v37 }
 0x222   : > { %v913_v53 = vmul.f32 1.442695, %v896_v50 }
 0x223   : > { %v833_v1 = vpop.permute.xlu1 %832 }
 0x224   : > { %1892 = vpow2.f32 %v913_v53  ;;  %v898_v38 = vsub.f32 %v2187_v7, %v833_v1 }
 0x226   : > { %v917_v46 = vmul.f32 1.442695, %v898_v38 }
 0x227   : > { %v828_v20 = vpop.permute.xlu1 %827 }
 0x228   : > { %1894 = vpow2.f32 %v917_v46  ;;  %v897_v32 = vsub.f32 %v2196_v10, %v828_v20 }
 0x22a   : > { %v915_v56 = vmul.f32 1.442695, %v897_v32 }
 0x22b   : > { %v843_v12 = vpop.permute.xlu1 %842 }
 0x22c   : > { %1896 = vpow2.f32 %v915_v56  ;;  %v900_v5 = vsub.f32 %v2202_v13, %v843_v12 }
 0x22d   : > { %v1891_v43 = vpop.eup %1890  ;;  %v863_v8 = vpop.permute.xlu0 %862 }
 0x22e   : > { %v921_v16 = vmul.f32 1.442695, %v900_v5  ;;  %975 = vadd.xlane.f32.xlu1 %v1891_v43  ;;  %1837 = vmatprep.mubr.f32.mxu1 %v1891_v43  ;;  %v904_v13 = vsub.f32 %v2222_v22, %v863_v8 }
 0x22f   : > { %v838_v9 = vpop.permute.xlu1 %837 }
 0x230   : > { %1898 = vpow2.f32 %v921_v16  ;;  %v899_v53 = vsub.f32 %v2206_v14, %v838_v9  ;;  %v929_v50 = vmul.f32 1.442695, %v904_v13 }
 0x231   : > { %v1893_v7 = vpop.eup %1892  ;;  %v873_v1 = vpop.permute.xlu0 %872 }
 0x232   : > { %v919_v38 = vmul.f32 1.442695, %v899_v53  ;;  %977 = vadd.xlane.f32.xlu0 %v1893_v7  ;;  %1838 = vmatmul.mubr.f32.vlgmr.msra.gmra.mxu1 %v1893_v7  ;;  %v906_v5 = vsub.f32 %v2232_v26, %v873_v1 }
 0x233   : > { %v853_v10 = vpop.permute.xlu1 %852 }
 0x234   : > { %1900 = vpow2.f32 %v919_v38  ;;  %v902_v56 = vsub.f32 %v2212_v17, %v853_v10  ;;  %v933_v8 = vmul.f32 1.442695, %v906_v5 }
 0x235   : > { %v1895_v20 = vpop.eup %1894  ;;  %v883_v46 = vpop.permute.xlu0 %882 }
 0x236   : > { %v925_v12 = vmul.f32 1.442695, %v902_v56  ;;  %981 = vadd.xlane.f32.xlu1 %v1895_v20  ;;  %v908_v9 = vsub.f32 %v2242_v30, %v883_v46 }
 0x237   : > { %v848_v32 = vpop.permute.xlu1 %847 }
 0x238   : > { %1902 = vpow2.f32 %v925_v12  ;;  %v901_v37 = vsub.f32 %v2216_v18, %v848_v32  ;;  %v937_v1 = vmul.f32 1.442695, %v908_v9 }
 0x239   : > { %v1897_v14 = vpop.eup %1896  ;;  %v893_v53 = vpop.permute.xlu0 %892 }
 0x23a   : > { %v923_v43 = vmul.f32 1.442695, %v901_v37  ;;  %979 = vadd.xlane.f32.xlu0 %v1897_v14  ;;  %1840 = vmatprep.mubr.f32.mxu1 %v1897_v14  ;;  %v910_v10 = vsub.f32 %v2284_v35, %v893_v53 }
 0x23b   : > { %v858_v16 = vpop.permute.xlu1 %857  ;;  %1841 = vmatmul.mubr.f32.gmra.mxu1 %v1895_v20 }
 0x23c   : > { %1904 = vpow2.f32 %v923_v43  ;;  %v903_v17 = vsub.f32 %v2226_v23, %v858_v16  ;;  %v941_v13 = vmul.f32 1.442695, %v910_v10  ;;  %v785_v16 = vmul.f32 1.442695, %v768_v61  ;;  %v943_v10 = vld [vmem:[#allocation4] sm:$0xff] }
 0x23d   : > { %v1899_v22 = vpop.eup %1898  ;;  %1906 = vpow2.f32 %v929_v50  ;;  %v2662_v61 = vsub.f32 %v2306_v45, %v2320_v52  ;;  %v2666_v45 = vsub.f32 %v2365_v15, %v2379_v29  ;;  %v2670_v29 = vsub.f32 %v2407_v48, %v2420_v0 }
 0x23e   : > { %v927_v7 = vmul.f32 1.442695, %v903_v17  ;;  %985 = vadd.xlane.f32.xlu1 %v1899_v22 }
 0x23f   : > { %v868_v18 = vpop.permute.xlu1 %867  ;;  %v789_v9 = vmul.f32 1.442695, %v2662_v61  ;;  %v797_v52 = vmul.f32 1.442695, %v2666_v45  ;;  %v805_v41 = vmul.f32 1.442695, %v2670_v29 }
 0x240   : > { %1908 = vpow2.f32 %v927_v7  ;;  %v905_v26 = vsub.f32 %v2236_v27, %v868_v18 }
 0x241   : > { %v1901_v38 = vpop.eup %1900  ;;  %1910 = vpow2.f32 %v933_v8  ;;  %v783_v8 = vmul.f32 1.442695, %v767_v51  ;;  %v2665_v51 = vsub.f32 %v2375_v25, %v2394_v39  ;;  %v2669_v39 = vsub.f32 %v2417_v60, %v2435_v19 }
 0x242   : > { %v931_v56 = vmul.f32 1.442695, %v905_v26  ;;  %983 = vadd.xlane.f32.xlu0 %v1901_v38  ;;  %1843 = vmatprep.mubr.f32.mxu1 %v1901_v38  ;;  %v2672_v19 = vsub.f32 %v2427_v4, %v2440_v34 }
 0x243   : > { %v878_v23 = vpop.permute.xlu1 %877  ;;  %1844 = vmatmul.mubr.f32.gmra.mxu1 %v1899_v22  ;;  %v787_v22 = vmul.f32 1.442695, %v769_v2  ;;  %v799_v59 = vmul.f32 1.442695, %v2665_v51  ;;  %v807_v53 = vmul.f32 1.442695, %v2669_v39 }
 0x244   : > { %1912 = vpow2.f32 %v931_v56  ;;  %v907_v30 = vsub.f32 %v2246_v31, %v878_v23  ;;  %v809_v18 = vmul.f32 1.442695, %v2672_v19 }
 0x245   : > { %v1903_v20 = vpop.eup %1902  ;;  %1914 = vpow2.f32 %v937_v1 }
 0x246   : > { %v935_v12 = vmul.f32 1.442695, %v907_v30  ;;  %989 = vadd.xlane.f32.xlu1 %v1903_v20  ;;  %v944_v30 = vld [vmem:[#allocation4 + $0x8] sm:$0xff] }
 0x247   : > { %v888_v32 = vpop.permute.xlu1 %887 }
 0x248   : > { %1916 = vpow2.f32 %v935_v12  ;;  %v909_v27 = vsub.f32 %v2288_v36, %v888_v32  ;;  %v946_v32 = vld [vmem:[#allocation4 + $0x18] sm:$0xff] }
 0x249   : > { %v1905_v46 = vpop.eup %1904  ;;  %1918 = vpow2.f32 %v941_v13 }
 0x24a   : > { %v1907_v35 = vpop.eup %1906  ;;  %v939_v37 = vmul.f32 1.442695, %v909_v27  ;;  %987 = vadd.xlane.f32.xlu0 %v1905_v46  ;;  %1846 = vmatprep.mubr.f32.mxu1 %v1905_v46 }
 0x24b   : > { %993 = vadd.xlane.f32.xlu1 %v1907_v35  ;;  %1847 = vmatmul.mubr.f32.gmra.mxu1 %v1903_v20 }
 0x24c   : > { %1920 = vpow2.f32 %v939_v37  ;;  %v945_v37 = vld [vmem:[#allocation4 + $0x10] sm:$0xff] }
 0x24d   : > { %v1909_v14 = vpop.eup %1908  ;;  %1922 = vpow2.f32 %v785_v16 }
 0x24e   : > { %v1911_v31 = vpop.eup %1910  ;;  %991 = vadd.xlane.f32.xlu0 %v1909_v14  ;;  %1849 = vmatprep.mubr.f32.mxu1 %v1909_v14  ;;  %1924 = vpow2.f32 %v787_v22 }
 0x24f   : > { %997 = vadd.xlane.f32.xlu1 %v1911_v31  ;;  %1850 = vmatmul.mubr.f32.gmra.mxu1 %v1907_v35  ;;  %1926 = vpow2.f32 %v783_v8  ;;  %v947_v8 = vld [vmem:[#allocation4 + $0x20] sm:$0xff] }
 0x250   : > { %1928 = vpow2.f32 %v791_v57 }
 0x251   : > { %v1913_v50 = vpop.eup %1912  ;;  %1930 = vpow2.f32 %v789_v9 }
 0x252   : > { %v1915_v5 = vpop.eup %1914  ;;  %995 = vadd.xlane.f32.xlu0 %v1913_v50  ;;  %1852 = vmatprep.mubr.f32.mxu1 %v1913_v50  ;;  %1932 = vpow2.f32 %v795_v62 }
 0x253   : > { %1001 = vadd.xlane.f32.xlu1 %v1915_v5  ;;  %1853 = vmatmul.mubr.f32.gmra.mxu1 %v1911_v31  ;;  %1934 = vpow2.f32 %v793_v47 }
 0x254   : > { %1936 = vpow2.f32 %v799_v59 }
 0x255   : > { %v1917_v36 = vpop.eup %1916  ;;  %1938 = vpow2.f32 %v797_v52  ;;  %v952_v52 = vld [vmem:[#allocation4 + $0x48] sm:$0xff] }
 0x256   : > { %v1919_v43 = vpop.eup %1918  ;;  %999 = vadd.xlane.f32.xlu0 %v1917_v36  ;;  %1855 = vmatprep.mubr.f32.mxu1 %v1917_v36  ;;  %1940 = vpow2.f32 %v803_v6  ;;  %v948_v36 = vld [vmem:[#allocation4 + $0x28] sm:$0xff] }
 0x257   : > { %1005 = vadd.xlane.f32.xlu1 %v1919_v43  ;;  %1856 = vmatmul.mubr.f32.gmra.mxu1 %v1915_v5  ;;  %1942 = vpow2.f32 %v801_v11 }
 0x258   : > { %1944 = vpow2.f32 %v807_v53 }
 0x259   : > { %v1921_v17 = vpop.eup %1920  ;;  %1946 = vpow2.f32 %v805_v41 }
 0x25a   : > { %1003 = vadd.xlane.f32.xlu0 %v1921_v17  ;;  %1858 = vmatprep.mubr.f32.mxu1 %v1921_v17  ;;  %v1923_v2 = vpop.eup %1922  ;;  %1948 = vpow2.f32 %v811_v44 }
 0x25b   : > { %1859 = vmatmul.mubr.f32.gmra.mxu1 %v1919_v43  ;;  %v1925_v21 = vpop.eup %1924  ;;  %1950 = vpow2.f32 %v809_v18  ;;  %v960_v13 = vmul.f32 %v1923_v2, %v944_v30 }
 0x25c   : > { %v1927_v25 = vpop.eup %1926  ;;  %1952 = vpow2.f32 %v813_v58  ;;  %v961_v50 = vmul.f32 %v1925_v21, %v945_v37 }
 0x25d   : > { %v2526_v15 = vpop.eup %1928  ;;  %v959_v56 = vmul.f32 %v1927_v25, %v943_v10 }
 0x25e   : > { %v1931_v55 = vpop.eup %1930  ;;  %v963_v61 = vmul.f32 %v2526_v15, %v947_v8 }
 0x25f   : > { %v2535_v7 = vpop.eup %1932  ;;  %v962_v46 = vmul.f32 %v1931_v55, %v946_v32 }
 0x260   : > { %v1935_v60 = vpop.eup %1934 }
 0x261   : > { %v2541_v48 = vpop.eup %1936  ;;  %v964_v17 = vmul.f32 %v1935_v60, %v948_v36 }
 0x262   : > { %v1939_v0 = vpop.eup %1938 }
 0x263   : > { %v2547_v26 = vpop.eup %1940  ;;  %v966_v47 = vmul.f32 %v1939_v0, %v950_v54  ;;  %v1041_v54 = vld [vmem:[#allocation5 + $0x8] sm:$0xff] }
 0x264   : > { %v2550_v38 = vpop.eup %1942 }
 0x265   : > { %v2552_v4 = vpop.eup %1944  ;;  %v968_v63 = vmul.f32 %v2550_v38, %v952_v52 }
 0x266   : > { %v2556_v34 = vpop.eup %1946 }
 0x267   : > { %v2558_v1 = vpop.eup %1948 }
 0x268   : > { %1063 = vperm.xlu1 %1889, %v1923_v2   ;;  %v2562_v40 = vpop.eup %1950  ;;  %v949_v2 = vld [vmem:[#allocation4 + $0x30] sm:$0xff] }
 0x269   : > { %v2565_v24 = vpop.eup %1952  ;;  %v965_v6 = vmul.f32 %v2535_v7, %v949_v2 }
 0x26c   : > { %1068 = vperm.xlu1 %1889, %v1925_v21  }
 0x270   : > { %1078 = vperm.xlu1 %1889, %v2526_v15   ;;  %1058 = vperm.xlu0 %1888, %v1927_v25   ;;  %v951_v25 = vld [vmem:[#allocation4 + $0x40] sm:$0xff]  ;;  %v954_v15 = vld [vmem:[#allocation4 + $0x58] sm:$0xff] }
 0x271   : > { %v970_v44 = vmul.f32 %v2556_v34, %v954_v15 }
 0x274   : > { %1088 = vperm.xlu1 %1889, %v2535_v7   ;;  %1073 = vperm.xlu0 %1888, %v1931_v55   ;;  %v967_v55 = vmul.f32 %v2541_v48, %v951_v25 }
 0x278   : > { %1098 = vperm.xlu1 %1889, %v2541_v48   ;;  %1083 = vperm.xlu0 %1888, %v1935_v60   ;;  %v953_v60 = vld [vmem:[#allocation4 + $0x50] sm:$0xff] }
 0x27c   : > { %1108 = vperm.xlu1 %1889, %v2547_v26   ;;  %1093 = vperm.xlu0 %1888, %v1939_v0   ;;  %v956_v0 = vld [vmem:[#allocation4 + $0x68] sm:$0xff] }
 0x27d   : > { %v972_v10 = vmul.f32 %v2562_v40, %v956_v0 }
 0x280   : > { %1118 = vperm.xlu1 %1889, %v2552_v4   ;;  %1103 = vperm.xlu0 %1888, %v2550_v38   ;;  %v969_v38 = vmul.f32 %v2547_v26, %v953_v60 }
 0x284   : > { %1128 = vperm.xlu1 %1889, %v2558_v1   ;;  %1113 = vperm.xlu0 %1888, %v2556_v34   ;;  %v955_v34 = vld [vmem:[#allocation4 + $0x60] sm:$0xff] }
 0x285   : > { %v971_v32 = vmul.f32 %v2552_v4, %v955_v34 }
 0x288   : > { %1123 = vperm.xlu0 %1888, %v2562_v40  }
 0x28c   : > { %1133 = vperm.xlu0 %1888, %v2565_v24  }
 0x2b7   : > { %v976_v23 = vpop.xlane.xlu1 %975 }
 0x2b8   : > { %v1007_v20 = vadd.f32 %v976_v23, %v959_v56 }
 0x2ba   : > { %1024 = vst.msk [vmem:[#allocation4] sm:$0xff] %vm342_vm1, %v1007_v20  ;;  %v958_v20 = vld [vmem:[#allocation4 + $0x78] sm:$0xff] }
 0x2bb   : > { %v978_v12 = vpop.xlane.xlu0 %977 }
 0x2bc   : > { %v1008_v27 = vadd.f32 %v978_v12, %v960_v13 }
 0x2be   : > { %1025 = vst.msk [vmem:[#allocation4 + $0x8] sm:$0xff] %vm342_vm1, %v1008_v27 }
 0x2bf   : > { %v982_v35 = vpop.xlane.xlu1 %981 }
 0x2c0   : > { %v1010_v14 = vadd.f32 %v982_v35, %v962_v46  ;;  %v974_v46 = vmul.f32 %v2565_v24, %v958_v20  ;;  %v957_v35 = vld [vmem:[#allocation4 + $0x70] sm:$0xff] }
 0x2c1   : > { %v1348_v31 = vld [vmem:[#allocation4] sm:$0xff] }
 0x2c2   : > { %1027 = vst.msk [vmem:[#allocation4 + $0x18] sm:$0xff] %vm342_vm1, %v1010_v14  ;;  %1954 = vrcp.f32 %v1348_v31 }
 0x2c3   : > { %v980_v5 = vpop.xlane.xlu0 %979 }
 0x2c4   : > { %v1009_v43 = vadd.f32 %v980_v5, %v961_v50  ;;  %v973_v5 = vmul.f32 %v2558_v1, %v957_v35 }
 0x2c5   : > { %v1349_v16 = vld [vmem:[#allocation4 + $0x8] sm:$0xff] }
 0x2c6   : > { %1026 = vst.msk [vmem:[#allocation4 + $0x10] sm:$0xff] %vm342_vm1, %v1009_v43  ;;  %1956 = vrcp.f32 %v1349_v16 }
 0x2c7   : > { %v986_v22 = vpop.xlane.xlu1 %985 }
 0x2c8   : > { %v1012_v49 = vadd.f32 %v986_v22, %v964_v17 }
 0x2c9   : > { %v1351_v57 = vld [vmem:[#allocation4 + $0x18] sm:$0xff] }
 0x2ca   : > { %1029 = vst.msk [vmem:[#allocation4 + $0x28] sm:$0xff] %vm342_vm1, %v1012_v49  ;;  %1958 = vrcp.f32 %v1351_v57 }
 0x2cb   : > { %v984_v9 = vpop.xlane.xlu0 %983 }
 0x2cc   : > { %v1011_v62 = vadd.f32 %v984_v9, %v963_v61 }
 0x2cd   : > { %v1350_v42 = vld [vmem:[#allocation4 + $0x10] sm:$0xff] }
 0x2ce   : > { %1028 = vst.msk [vmem:[#allocation4 + $0x20] sm:$0xff] %vm342_vm1, %v1011_v62  ;;  %1960 = vrcp.f32 %v1350_v42 }
 0x2cf   : > { %v1955_v51 = vpop.eup %1954  ;;  %v990_v59 = vpop.xlane.xlu1 %989 }
 0x2d0   : > { %v1014_v45 = vadd.f32 %v990_v59, %v966_v47  ;;  %1398 = vperm.xlu1 %1889, %v1955_v51   ;;  %v1040_v51 = vld [vmem:[#allocation5] sm:$0xff] }
 0x2d1   : > { %v1353_v3 = vld [vmem:[#allocation4 + $0x28] sm:$0xff] }
 0x2d2   : > { %1031 = vst.msk [vmem:[#allocation4 + $0x38] sm:$0xff] %vm342_vm1, %v1014_v45  ;;  %1962 = vrcp.f32 %v1353_v3 }
 0x2d3   : > { %v1957_v21 = vpop.eup %1956  ;;  %v988_v11 = vpop.xlane.xlu0 %987 }
 0x2d4   : > { %v994_v39 = vpop.xlane.xlu1 %993  ;;  %v1013_v53 = vadd.f32 %v988_v11, %v965_v6  ;;  %1403 = vperm.xlu0 %1888, %v1957_v21  }
 0x2d5   : > { %v1016_v29 = vadd.f32 %v994_v39, %v968_v63  ;;  %v1352_v41 = vld [vmem:[#allocation4 + $0x20] sm:$0xff] }
 0x2d6   : > { %1030 = vst.msk [vmem:[#allocation4 + $0x30] sm:$0xff] %vm342_vm1, %v1013_v53  ;;  %1964 = vrcp.f32 %v1352_v41  ;;  %v1043_v53 = vld [vmem:[#allocation5 + $0x18] sm:$0xff] }
 0x2d7   : > { %v1959_v33 = vpop.eup %1958  ;;  %1033 = vst.msk [vmem:[#allocation4 + $0x48] sm:$0xff] %vm342_vm1, %v1016_v29  ;;  %v992_v7 = vpop.xlane.xlu0 %991  ;;  %v1042_v29 = vld [vmem:[#allocation5 + $0x10] sm:$0xff] }
 0x2d8   : > { %v998_v19 = vpop.xlane.xlu1 %997  ;;  %v1015_v18 = vadd.f32 %v992_v7, %v967_v55  ;;  %1413 = vperm.xlu0 %1888, %v1959_v33  }
 0x2d9   : > { %v1018_v28 = vadd.f32 %v998_v19, %v970_v44  ;;  %v1355_v58 = vld [vmem:[#allocation4 + $0x38] sm:$0xff] }
 0x2da   : > { %1032 = vst.msk [vmem:[#allocation4 + $0x40] sm:$0xff] %vm342_vm1, %v1015_v18  ;;  %1966 = vrcp.f32 %v1355_v58 }
 0x2db   : > { %v1961_v48 = vpop.eup %1960  ;;  %1035 = vst.msk [vmem:[#allocation4 + $0x58] sm:$0xff] %vm342_vm1, %v1018_v28  ;;  %v996_v56 = vpop.xlane.xlu0 %995  ;;  %v1045_v28 = vld [vmem:[#allocation5 + $0x28] sm:$0xff] }
 0x2dc   : > { %v1002_v23 = vpop.xlane.xlu1 %1001  ;;  %v1017_v30 = vadd.f32 %v996_v56, %v969_v38  ;;  %1408 = vperm.xlu1 %1889, %v1961_v48   ;;  %v1044_v38 = vld [vmem:[#allocation5 + $0x20] sm:$0xff] }
 0x2dd   : > { %v1020_v13 = vadd.f32 %v1002_v23, %v972_v10  ;;  %v1354_v12 = vld [vmem:[#allocation4 + $0x30] sm:$0xff] }
 0x2de   : > { %1034 = vst.msk [vmem:[#allocation4 + $0x50] sm:$0xff] %vm342_vm1, %v1017_v30  ;;  %v1357_v27 = vld [vmem:[#allocation4 + $0x48] sm:$0xff]  ;;  %1968 = vrcp.f32 %v1354_v12 }
 0x2df   : > { %v1963_v26 = vpop.eup %1962  ;;  %1037 = vst.msk [vmem:[#allocation4 + $0x68] sm:$0xff] %vm342_vm1, %v1020_v13  ;;  %v1000_v40 = vpop.xlane.xlu0 %999  ;;  %1970 = vrcp.f32 %v1357_v27  ;;  %v1046_v27 = vld [vmem:[#allocation5 + $0x30] sm:$0xff] }
 0x2e0   : > { %v1006_v37 = vpop.xlane.xlu1 %1005  ;;  %v1019_v14 = vadd.f32 %v1000_v40, %v971_v32  ;;  %1423 = vperm.xlu0 %1888, %v1963_v26   ;;  %v1047_v32 = vld [vmem:[#allocation5 + $0x38] sm:$0xff] }
 0x2e1   : > { %v1022_v31 = vadd.f32 %v1006_v37, %v974_v46  ;;  %v1356_v50 = vld [vmem:[#allocation4 + $0x40] sm:$0xff]  ;;  %v1049_v46 = vld [vmem:[#allocation5 + $0x48] sm:$0xff] }
 0x2e2   : > { %1036 = vst.msk [vmem:[#allocation4 + $0x60] sm:$0xff] %vm342_vm1, %v1019_v14  ;;  %v1359_v4 = vld [vmem:[#allocation4 + $0x58] sm:$0xff]  ;;  %1972 = vrcp.f32 %v1356_v50 }
 0x2e3   : > { %v1965_v36 = vpop.eup %1964  ;;  %1039 = vst.msk [vmem:[#allocation4 + $0x78] sm:$0xff] %vm342_vm1, %v1022_v31  ;;  %v1004_v43 = vpop.xlane.xlu0 %1003  ;;  %1974 = vrcp.f32 %v1359_v4  ;;  %v1048_v31 = vld [vmem:[#allocation5 + $0x40] sm:$0xff] }
 0x2e4   : > { %v1021_v24 = vadd.f32 %v1004_v43, %v973_v5  ;;  %1418 = vperm.xlu1 %1889, %v1965_v36   ;;  %v1064_v62 = vpop.permute.xlu1 %1063  ;;  %v1051_v43 = vld [vmem:[#allocation5 + $0x58] sm:$0xff] }
 0x2e5   : > { %v1358_v16 = vld [vmem:[#allocation4 + $0x50] sm:$0xff]  ;;  %v1137_v59 = vmul.f32 %v1064_v62, %v1041_v54 }
 0x2e6   : > { %1038 = vst.msk [vmem:[#allocation4 + $0x70] sm:$0xff] %vm342_vm1, %v1021_v24  ;;  %v1361_v17 = vld [vmem:[#allocation4 + $0x68] sm:$0xff]  ;;  %1976 = vrcp.f32 %v1358_v16 }
 0x2e7   : > { %v1967_v22 = vpop.eup %1966  ;;  %1978 = vrcp.f32 %v1361_v17 }
 0x2e8   : > { %1433 = vperm.xlu0 %1888, %v1967_v22   ;;  %v1069_v11 = vpop.permute.xlu1 %1068  ;;  %v1050_v22 = vld [vmem:[#allocation5 + $0x50] sm:$0xff] }
 0x2e9   : > { %v1360_v8 = vld [vmem:[#allocation4 + $0x60] sm:$0xff]  ;;  %v1138_v60 = vmul.f32 %v1069_v11, %v1042_v29 }
 0x2ea   : > { %v1363_v49 = vld [vmem:[#allocation4 + $0x78] sm:$0xff]  ;;  %1980 = vrcp.f32 %v1360_v8 }
 0x2eb   : > { %v1969_v1 = vpop.eup %1968  ;;  %1982 = vrcp.f32 %v1363_v49  ;;  %v1059_v61 = vpop.permute.xlu0 %1058 }
 0x2ec   : > { %v1971_v57 = vpop.eup %1970  ;;  %1428 = vperm.xlu1 %1889, %v1969_v1   ;;  %v1136_v52 = vmul.f32 %v1059_v61, %v1040_v51  ;;  %v1079_v44 = vpop.permute.xlu1 %1078 }
 0x2ed   : > { %1443 = vperm.xlu0 %1888, %v1971_v57   ;;  %v1362_v9 = vld [vmem:[#allocation4 + $0x70] sm:$0xff]  ;;  %v1140_v34 = vmul.f32 %v1079_v44, %v1044_v38 }
 0x2ee   : > { %1984 = vrcp.f32 %v1362_v9  ;;  %v1053_v9 = vld [vmem:[#allocation5 + $0x68] sm:$0xff] }
 0x2ef   : > { %v1973_v42 = vpop.eup %1972  ;;  %v1074_v3 = vpop.permute.xlu0 %1073 }
 0x2f0   : > { %v1975_v47 = vpop.eup %1974  ;;  %1438 = vperm.xlu1 %1889, %v1973_v42   ;;  %v1139_v55 = vmul.f32 %v1074_v3, %v1043_v53  ;;  %v1089_v48 = vpop.permute.xlu1 %1088 }
 0x2f1   : > { %1453 = vperm.xlu0 %1888, %v1975_v47   ;;  %v1142_v37 = vmul.f32 %v1089_v48, %v1046_v27  ;;  %v1052_v47 = vld [vmem:[#allocation5 + $0x60] sm:$0xff] }
 0x2f2   : > { %v1839_v2 = vpop.f32.mrf.mxu1 }
 0x2f3   : > { %v1977_v45 = vpop.eup %1976  ;;  %v1298_v6 = vadd.f32 %v1839_v2, %v1137_v59  ;;  %v1084_v41 = vpop.permute.xlu0 %1083 }
 0x2f4   : > { %v1979_v21 = vpop.eup %1978  ;;  %v1218_v63 = vpop.f32.mrf.mxu1  ;;  %1448 = vperm.xlu1 %1889, %v1977_v45   ;;  %v1141_v10 = vmul.f32 %v1084_v41, %v1045_v28  ;;  %v1055_v45 = vld [vmem:[#allocation5 + $0x78] sm:$0xff] }
 0x2f5   : > { %1314 = vst.msk [vmem:[#allocation5 + $0x8] sm:$0xff] %vm325_vm0, %v1298_v6  ;;  %v1297_v25 = vadd.f32 %v1218_v63, %v1136_v52  ;;  %1463 = vperm.xlu0 %1888, %v1979_v21   ;;  %v1099_v12 = vpop.permute.xlu1 %1098  ;;  %v1054_v63 = vld [vmem:[#allocation5 + $0x70] sm:$0xff] }
 0x2f6   : > { %v1144_v16 = vmul.f32 %v1099_v12, %v1048_v31 }
 0x2f7   : > { %v1981_v39 = vpop.eup %1980  ;;  %1313 = vst.msk [vmem:[#allocation5] sm:$0xff] %vm325_vm0, %v1297_v25  ;;  %v1094_v58 = vpop.permute.xlu0 %1093 }
 0x2f8   : > { %v1983_v15 = vpop.eup %1982  ;;  %1458 = vperm.xlu1 %1889, %v1981_v39   ;;  %v1143_v26 = vmul.f32 %v1094_v58, %v1047_v32 }
 0x2f9   : > { %1473 = vperm.xlu0 %1888, %v1983_v15   ;;  %v1109_v50 = vpop.permute.xlu1 %1108 }
 0x2fa   : > { %v1146_v62 = vmul.f32 %v1109_v50, %v1050_v22 }
 0x2fb   : > { %v1985_v33 = vpop.eup %1984  ;;  %v1842_v7 = vpop.f32.mrf.mxu1 }
 0x2fc   : > { %v1300_v19 = vadd.f32 %v1842_v7, %v1139_v55  ;;  %1468 = vperm.xlu1 %1889, %v1985_v33   ;;  %v1104_v30 = vpop.permute.xlu0 %1103 }
 0x2fd   : > { %v1228_v18 = vpop.f32.mrf.mxu1  ;;  %v1145_v4 = vmul.f32 %v1104_v30, %v1049_v46  ;;  %v1119_v61 = vpop.permute.xlu1 %1118 }
 0x2fe   : > { %1316 = vst.msk [vmem:[#allocation5 + $0x18] sm:$0xff] %vm325_vm0, %v1300_v19  ;;  %v1299_v0 = vadd.f32 %v1228_v18, %v1138_v60  ;;  %v1148_v6 = vmul.f32 %v1119_v61, %v1052_v47  ;;  %v1380_v7 = vld [vmem:[#allocation5] sm:$0xff]  ;;  %v1381_v19 = vld [vmem:[#allocation5 + $0x8] sm:$0xff] }
 0x300   : > { %1315 = vst.msk [vmem:[#allocation5 + $0x10] sm:$0xff] %vm325_vm0, %v1299_v0  ;;  %v1114_v40 = vpop.permute.xlu0 %1113 }
 0x301   : > { %v1147_v1 = vmul.f32 %v1114_v40, %v1051_v43  ;;  %v1129_v11 = vpop.permute.xlu1 %1128 }
 0x302   : > { %v1150_v29 = vmul.f32 %v1129_v11, %v1054_v63 }
 0x303   : > { %v1845_v56 = vpop.f32.mrf.mxu1 }
 0x304   : > { %v1302_v23 = vadd.f32 %v1845_v56, %v1141_v10  ;;  %v1124_v8 = vpop.permute.xlu0 %1123 }
 0x305   : > { %v1238_v20 = vpop.f32.mrf.mxu1  ;;  %v1149_v59 = vmul.f32 %v1124_v8, %v1053_v9  ;;  %v1383_v28 = vld [vmem:[#allocation5 + $0x18] sm:$0xff] }
 0x306   : > { %1318 = vst.msk [vmem:[#allocation5 + $0x28] sm:$0xff] %vm325_vm0, %v1302_v23  ;;  %v1301_v13 = vadd.f32 %v1238_v20, %v1140_v34 }
 0x307   : > { %v1382_v48 = vld [vmem:[#allocation5 + $0x10] sm:$0xff] }
 0x308   : > { %1317 = vst.msk [vmem:[#allocation5 + $0x20] sm:$0xff] %vm325_vm0, %v1301_v13  ;;  %v1134_v52 = vpop.permute.xlu0 %1133 }
 0x309   : > { %v1151_v39 = vmul.f32 %v1134_v52, %v1055_v45 }
 0x30b   : > { %v1848_v35 = vpop.f32.mrf.mxu1 }
 0x30c   : > { %v1304_v14 = vadd.f32 %v1848_v35, %v1143_v26 }
 0x30d   : > { %v1248_v5 = vpop.f32.mrf.mxu1  ;;  %v1385_v34 = vld [vmem:[#allocation5 + $0x28] sm:$0xff] }
 0x30e   : > { %1320 = vst.msk [vmem:[#allocation5 + $0x38] sm:$0xff] %vm325_vm0, %v1304_v14  ;;  %v1303_v36 = vadd.f32 %v1248_v5, %v1142_v37 }
 0x30f   : > { %v1851_v24 = vpop.f32.mrf.mxu1  ;;  %v1384_v20 = vld [vmem:[#allocation5 + $0x20] sm:$0xff] }
 0x310   : > { %1319 = vst.msk [vmem:[#allocation5 + $0x30] sm:$0xff] %vm325_vm0, %v1303_v36  ;;  %v1306_v17 = vadd.f32 %v1851_v24, %v1145_v4 }
 0x311   : > { %v1258_v49 = vpop.f32.mrf.mxu1 }
 0x312   : > { %1322 = vst.msk [vmem:[#allocation5 + $0x48] sm:$0xff] %vm325_vm0, %v1306_v17  ;;  %v1305_v57 = vadd.f32 %v1258_v49, %v1144_v16 }
 0x313   : > { %v1854_v54 = vpop.f32.mrf.mxu1 }
 0x314   : > { %1321 = vst.msk [vmem:[#allocation5 + $0x40] sm:$0xff] %vm325_vm0, %v1305_v57  ;;  %v1308_v42 = vadd.f32 %v1854_v54, %v1147_v1 }
 0x315   : > { %v1268_v51 = vpop.f32.mrf.mxu1  ;;  %v1387_v32 = vld [vmem:[#allocation5 + $0x38] sm:$0xff] }
 0x316   : > { %1324 = vst.msk [vmem:[#allocation5 + $0x58] sm:$0xff] %vm325_vm0, %v1308_v42  ;;  %v1307_v2 = vadd.f32 %v1268_v51, %v1146_v62 }
 0x317   : > { %v1857_v3 = vpop.f32.mrf.mxu1  ;;  %v1386_v46 = vld [vmem:[#allocation5 + $0x30] sm:$0xff] }
 0x318   : > { %1323 = vst.msk [vmem:[#allocation5 + $0x50] sm:$0xff] %vm325_vm0, %v1307_v2  ;;  %v1310_v21 = vadd.f32 %v1857_v3, %v1149_v59 }
 0x319   : > { %v1278_v25 = vpop.f32.mrf.mxu1  ;;  %v1389_v37 = vld [vmem:[#allocation5 + $0x48] sm:$0xff] }
 0x31a   : > { %1326 = vst.msk [vmem:[#allocation5 + $0x68] sm:$0xff] %vm325_vm0, %v1310_v21  ;;  %v1309_v53 = vadd.f32 %v1278_v25, %v1148_v6 }
 0x31b   : > { %v1860_v15 = vpop.f32.mrf.mxu1  ;;  %v1388_v50 = vld [vmem:[#allocation5 + $0x40] sm:$0xff] }
 0x31c   : > { %1325 = vst.msk [vmem:[#allocation5 + $0x60] sm:$0xff] %vm325_vm0, %v1309_v53  ;;  %v1312_v41 = vadd.f32 %v1860_v15, %v1151_v39 }
 0x31d   : > { %v1288_v55 = vpop.f32.mrf.mxu1  ;;  %v1391_v36 = vld [vmem:[#allocation5 + $0x58] sm:$0xff] }
 0x31e   : > { %1328 = vst.msk [vmem:[#allocation5 + $0x78] sm:$0xff] %vm325_vm0, %v1312_v41  ;;  %v1311_v33 = vadd.f32 %v1288_v55, %v1150_v29 }
 0x31f   : > { %v1390_v16 = vld [vmem:[#allocation5 + $0x50] sm:$0xff] }
 0x320   : > { %1327 = vst.msk [vmem:[#allocation5 + $0x70] sm:$0xff] %vm325_vm0, %v1311_v33 }
 0x321   : > { %v1393_v8 = vld [vmem:[#allocation5 + $0x68] sm:$0xff] }
 0x323   : > { %v1392_v57 = vld [vmem:[#allocation5 + $0x60] sm:$0xff] }
 0x325   : > { %v1395_v54 = vld [vmem:[#allocation5 + $0x78] sm:$0xff] }
 0x327   : > { %v1394_v47 = vld [vmem:[#allocation5 + $0x70] sm:$0xff] }
 0x34b   : > { %v1399_v44 = vpop.permute.xlu1 %1398 }
 0x34c   : > { %v1476_v60 = vmul.f32 %v1399_v44, %v1380_v7 }
 0x34e   : > { %1492 = vst.msk [vmem:[%s2614_s28] sm:$0xff] %vm325_vm0, %v1476_v60 }
 0x34f   : > { %v1404_v18 = vpop.permute.xlu0 %1403 }
 0x350   : > { %v1477_v0 = vmul.f32 %v1404_v18, %v1381_v19 }
 0x352   : > { %1493 = vst.msk [vmem:[%s2614_s28 + $0x8] sm:$0xff] %vm325_vm0, %v1477_v0 }
 0x353   : > { %v1414_v58 = vpop.permute.xlu0 %1413 }
 0x354   : > { %v1479_v38 = vmul.f32 %v1414_v58, %v1383_v28 }
 0x356   : > { %1495 = vst.msk [vmem:[%s2614_s28 + $0x18] sm:$0xff] %vm325_vm0, %v1479_v38 }
 0x357   : > { %v1409_v10 = vpop.permute.xlu1 %1408 }
 0x358   : > { %v1478_v56 = vmul.f32 %v1409_v10, %v1382_v48 }
 0x35a   : > { %1494 = vst.msk [vmem:[%s2614_s28 + $0x10] sm:$0xff] %vm325_vm0, %v1478_v56 }
 0x35b   : > { %v1424_v23 = vpop.permute.xlu0 %1423 }
 0x35c   : > { %v1481_v30 = vmul.f32 %v1424_v23, %v1385_v34 }
 0x35e   : > { %1497 = vst.msk [vmem:[%s2614_s28 + $0x28] sm:$0xff] %vm325_vm0, %v1481_v30 }
 0x35f   : > { %v1419_v13 = vpop.permute.xlu1 %1418 }
 0x360   : > { %v1480_v12 = vmul.f32 %v1419_v13, %v1384_v20 }
 0x362   : > { %1496 = vst.msk [vmem:[%s2614_s28 + $0x20] sm:$0xff] %vm325_vm0, %v1480_v12 }
 0x363   : > { %v1434_v27 = vpop.permute.xlu0 %1433 }
 0x364   : > { %v1483_v26 = vmul.f32 %v1434_v27, %v1387_v32 }
 0x366   : > { %1499 = vst.msk [vmem:[%s2614_s28 + $0x38] sm:$0xff] %vm325_vm0, %v1483_v26 }
 0x367   : > { %v1429_v40 = vpop.permute.xlu1 %1428 }
 0x368   : > { %v1482_v35 = vmul.f32 %v1429_v40, %v1386_v46  ;;  %v1444_v14 = vpop.permute.xlu0 %1443 }
 0x369   : > { %v1485_v31 = vmul.f32 %v1444_v14, %v1389_v37 }
 0x36a   : > { %1498 = vst.msk [vmem:[%s2614_s28 + $0x30] sm:$0xff] %vm325_vm0, %v1482_v35 }
 0x36b   : > { %1501 = vst.msk [vmem:[%s2614_s28 + $0x48] sm:$0xff] %vm325_vm0, %v1485_v31  ;;  %v1439_v5 = vpop.permute.xlu1 %1438 }
 0x36c   : > { %v1484_v4 = vmul.f32 %v1439_v5, %v1388_v50  ;;  %v1454_v43 = vpop.permute.xlu0 %1453 }
 0x36d   : > { %v1487_v24 = vmul.f32 %v1454_v43, %v1391_v36 }
 0x36e   : > { %1500 = vst.msk [vmem:[%s2614_s28 + $0x40] sm:$0xff] %vm325_vm0, %v1484_v4 }
 0x36f   : > { %1503 = vst.msk [vmem:[%s2614_s28 + $0x58] sm:$0xff] %vm325_vm0, %v1487_v24  ;;  %v1449_v17 = vpop.permute.xlu1 %1448 }
 0x370   : > { %v1486_v22 = vmul.f32 %v1449_v17, %v1390_v16  ;;  %v1464_v49 = vpop.permute.xlu0 %1463 }
 0x371   : > { %v1489_v1 = vmul.f32 %v1464_v49, %v1393_v8 }
 0x372   : > { %1502 = vst.msk [vmem:[%s2614_s28 + $0x50] sm:$0xff] %vm325_vm0, %v1486_v22 }
 0x373   : > { %1505 = vst.msk [vmem:[%s2614_s28 + $0x68] sm:$0xff] %vm325_vm0, %v1489_v1  ;;  %v1459_v61 = vpop.permute.xlu1 %1458 }
 0x374   : > { %v1488_v9 = vmul.f32 %v1459_v61, %v1392_v57  ;;  %v1474_v62 = vpop.permute.xlu0 %1473 }
 0x375   : > { %v1491_v42 = vmul.f32 %v1474_v62, %v1395_v54 }
 0x376   : > { %1504 = vst.msk [vmem:[%s2614_s28 + $0x60] sm:$0xff] %vm325_vm0, %v1488_v9 }
 0x377   : > { %1507 = vst.msk [vmem:[%s2614_s28 + $0x78] sm:$0xff] %vm325_vm0, %v1491_v42  ;;  %v1469_v51 = vpop.permute.xlu1 %1468 }
 0x378   : > { %v1490_v59 = vmul.f32 %v1469_v51, %v1394_v47 }
 0x37a   : > { %1506 = vst.msk [vmem:[%s2614_s28 + $0x70] sm:$0xff] %vm325_vm0, %v1490_v59 }
 0x37b PF: > { %s13_s14 = sadd.s32 1, %s2008_s14   ;;  %s2674_s12 = smov %s2004_s13 }
 0x37c   : > { %p10_p5 = scmp.ge.s32.totalorder %s13_s14, 6   ;;  %s2675_s13 = smov %s2677_s15 }
 0x37e   :  { %12 = sbr.rel (!%p10_p5) target bundleno = 2 (0x2), region = 76 }

</bundles_post_ra>
